<compile_context>
chip_gen: v7x
topology: tpu7x:2x2x1
jax: 0.10.0
libtpu: 0.0.40
codegen_flags: <defaults>
</compile_context>

<pallas_src>
import jax
import jax.numpy as jnp
from jax import lax
from jax.experimental import pallas as pl
from jax.experimental.pallas import tpu as pltpu


def _upsample_conv_kernel(x_ref, w_ref, b_ref, o_ref):
    """Fused polyphase (2x nearest upsample + 3x3 conv) for one output tile.

    x_ref: (1, h+2, w+2, Cin)   zero-padded ORIGINAL-resolution frame
    w_ref: (16, Cin, Cout_t)    polyphase taps, index = 4*(2*py+px) + (2*ty+tx)
    b_ref: (1, Cout_t)
    o_ref: (1, TH, Wo, Cout_t)  TH rows of the 2x-upsampled output frame
    """
    _, _Hp, Wp, Cin = x_ref.shape
    _, TH, Wo, Cout = o_ref.shape
    THl = TH // 2                      # low-res rows feeding this tile
    Wl = Wo // 2                       # low-res cols (== w)

    # Low-res padded rows for this output row tile (the wrapper's 1-pixel zero
    # border supplies the conv's padding=1 at the frame edges).
    p0 = pl.multiple_of(pl.program_id(1) * THl, THl)
    xin = x_ref[:, pl.ds(p0, THl + 2), :, :].reshape(THl + 2, Wp, Cin)

    # Pre-build the three column-shifted copies ONCE per tile (the only
    # sublane-unaligned slices); all row shifts below are leading-dim slices.
    xc = [xin[:, s:s + Wl, :] for s in range(3)]       # each (THl+2, Wl, Cin)

    # Bias-initialised f32 accumulator (hoisted broadcast, reused by 4 phases).
    bias_row = jnp.broadcast_to(b_ref[...].astype(jnp.float32),
                                (THl * Wl, Cout))

    phase_rows = []
    for py in range(2):                                # output row phase
        phase_cols = []
        for px in range(2):                            # output col phase
            acc = bias_row
            for ty in range(2):                        # 2x2 polyphase taps
                for tx in range(2):
                    patch = xc[px + tx][py + ty:py + ty + THl]  # (THl, Wl, Cin)
                    acc = acc + jnp.dot(
                        patch.reshape(THl * Wl, Cin),
                        w_ref[4 * (2 * py + px) + (2 * ty + tx)],
                        preferred_element_type=jnp.float32)
            phase_cols.append(acc.reshape(THl, Wl, Cout))
        # interleave column phases: out[., 2q+px, :] = phase_cols[px][., q, :]
        phase_rows.append(jnp.stack(phase_cols, axis=2).reshape(THl, Wo, Cout))
    # interleave row phases: out[2p+py, ., :] = phase_rows[py][p, ., :]
    out = jnp.stack(phase_rows, axis=1).reshape(TH, Wo, Cout)
    o_ref[0] = out.astype(o_ref.dtype)


# Which original 3x3 taps (indices along one axis) fold into polyphase tap t
# of output phase p: out[2*i + p] touches low-res rows i+p+t, t in {0, 1}.
_TAP_GROUPS = {(0, 0): (0,), (0, 1): (1, 2), (1, 0): (0, 1), (1, 1): (2,)}


def _polyphase_weights(weight):
    """(cout, cin, 3, 3) -> (16, cin, cout); index = 4*(2*py+px) + (2*ty+tx)."""
    wt = jnp.transpose(weight, (2, 3, 1, 0))           # (ky, kx, cin, cout)
    mats = []
    for py in range(2):
        for px in range(2):
            for ty in range(2):
                for tx in range(2):
                    mats.append(sum(wt[ky, kx]
                                    for ky in _TAP_GROUPS[(py, ty)]
                                    for kx in _TAP_GROUPS[(px, tx)]))
    return jnp.stack(mats)                             # (16, cin, cout)


def _pick_tiles(h, w, cin, cout, itemsize, budget):
    """Pick (block_h, block_cout) whose double-buffered working set fits."""
    Ho, Wo = 2 * h, 2 * w
    frame_b = (h + 2) * (w + 2) * cin * itemsize * 2        # double-buffered

    def w_bytes(tc):
        return 16 * cin * tc * itemsize * 2                 # double-buffered

    block_cout = cout
    if w_bytes(cout) > budget // 2:
        cands = [d for d in range(128, cout, 128)
                 if cout % d == 0 and w_bytes(d) <= budget // 2]
        if cands:
            block_cout = max(cands)
        elif cout >= 128 and cout % 128 == 0:
            block_cout = 128

    fixed = frame_b + w_bytes(block_cout)
    best = 2
    for th in range(2, Ho + 1, 2):
        if Ho % th:
            continue
        thl = th // 2
        out_b = th * Wo * block_cout * itemsize * 2         # double-buffered
        tmp_b = (4 * (thl + 2) * (w + 2) * cin * itemsize   # col-shifted copies
                 + 3 * th * Wo * block_cout * 4)            # f32 acc/interleave
        if fixed + out_b + tmp_b <= budget:
            best = th
    return best, block_cout


def upsample3d_forward(x, weight, bias, *, block_h=None, block_cout=None,
                       compute_dtype=None):
    """x: (b, c, f, h, w); weight: (cout, cin, 3, 3); bias: (cout,).

    Returns (b, cout, f, 2h, 2w) == Upsample3D.forward (use_conv=True).
    Pass compute_dtype=jnp.bfloat16 to force bf16 matmuls (f32 accumulation).
    """
    b, c, f, h, w = x.shape
    cout = weight.shape[0]
    Ho, Wo = 2 * h, 2 * w
    cdt = compute_dtype or x.dtype

    # NOTE: the PyTorch module round-trips bf16 -> f32 -> bf16 around nearest
    # interpolation; nearest replication is exact in any dtype, so it's dropped.

    # (b, c, f, h, w) -> (b*f, h, w, c): channels on the lane axis; 1-pixel
    # zero border on the ORIGINAL-resolution frame becomes the conv's
    # padding=1 after the polyphase fold (no upsampled tensor ever hits HBM).
    # TODO(synk): the pad (and the final NCFHW transpose) are extra HBM passes;
    # they could be folded into the kernel / the surrounding model's layout.
    xt = jnp.transpose(x, (0, 2, 3, 4, 1)).reshape(b * f, h, w, c)
    xp = jnp.pad(xt.astype(cdt), ((0, 0), (1, 1), (1, 1), (0, 0)))

    w_poly = _polyphase_weights(weight).astype(cdt)         # (16, c, cout)
    b2 = bias.reshape(1, cout).astype(jnp.float32)

    itemsize = jnp.dtype(cdt).itemsize

    # Generation-aware VMEM budget: 0.75x physical capacity (v7x: ~48 MiB,
    # v5e/v6e: capped ~100 MiB), leaving compiler headroom.
    try:
        vmem_cap = pltpu.get_tpu_info().vmem_capacity_bytes
    except Exception:
        vmem_cap = 64 << 20
    vmem_limit = int(min(0.75 * vmem_cap, 100 << 20))

    auto_bh, auto_bc = _pick_tiles(h, w, c, cout, itemsize,
                                   int(vmem_limit * 0.8))
    block_h = block_h or auto_bh
    block_cout = block_cout or auto_bc
    assert Ho % block_h == 0 and block_h % 2 == 0, \
        "block_h must be an even divisor of 2*h"
    assert cout % block_cout == 0
    n_r = Ho // block_h
    n_ct = cout // block_cout

    out = pl.pallas_call(
        _upsample_conv_kernel,
        out_shape=jax.ShapeDtypeStruct((b * f, Ho, Wo, cout), x.dtype),
        grid=(b * f, n_r, n_ct),
        in_specs=[
            # Whole padded low-res frame: block index constant across (r, ct),
            # so it is DMA'd once per frame.
            pl.BlockSpec((1, h + 2, w + 2, c), lambda n, r, t: (n, 0, 0, 0)),
            # Polyphase weights, tiled along Cout.
            pl.BlockSpec((16, c, block_cout), lambda n, r, t: (0, 0, t)),
            pl.BlockSpec((1, block_cout), lambda n, r, t: (0, t)),
        ],
        out_specs=pl.BlockSpec((1, block_h, Wo, block_cout),
                               lambda n, r, t: (n, r, 0, t)),
        compiler_params=pltpu.CompilerParams(
            # Frames first & parallel: on v7x the two TensorCores split on
            # frames, so each core keeps one frame + its weight slice resident.
            dimension_semantics=("parallel", "arbitrary", "arbitrary"),
            vmem_limit_bytes=vmem_limit),
    )(xp, w_poly, b2)

    # (b*f, Ho, Wo, cout) -> (b, cout, f, Ho, Wo): the module's NCFHW contract.
    return out.reshape(b, f, Ho, Wo, cout).transpose(0, 4, 1, 2, 3)


def _reference(x, weight, bias):
    """Pure-JAX reference of Upsample3D forward (NCFHW in/out)."""
    b, c, f, h, w = x.shape
    cout = weight.shape[0]
    xt = jnp.transpose(x, (0, 2, 3, 4, 1)).reshape(b * f, h, w, c)
    up = jnp.repeat(jnp.repeat(xt, 2, axis=1), 2, axis=2)
    w_hwio = jnp.transpose(weight, (2, 3, 1, 0))   # (3,3,cin,cout)
    y = lax.conv_general_dilated(
        up, w_hwio, window_strides=(1, 1), padding=((1, 1), (1, 1)),
        dimension_numbers=("NHWC", "HWIO", "NHWC"))
    y = y + bias[None, None, None, :]
    return y.reshape(b, f, 2 * h, 2 * w, cout).transpose(0, 4, 1, 2, 3)


if __name__ == "__main__":
    key = jax.random.PRNGKey(0)
    k_x, k_w, k_b = jax.random.split(key, 3)

    b, channels, f, h, w = 2, 4, 4, 8, 8
    out_channels = 4

    x = jax.random.normal(k_x, (b, channels, f, h, w), dtype=jnp.float32)
    fan_in = channels * 3 * 3
    bound = 1.0 / (fan_in ** 0.5)
    weight = jax.random.uniform(k_w, (out_channels, channels, 3, 3),
                                dtype=jnp.float32, minval=-bound, maxval=bound)
    bias = jax.random.uniform(k_b, (out_channels,), dtype=jnp.float32,
                              minval=-bound, maxval=bound)

    # block_h=8 -> 2 row tiles per frame, exercising the row-tiled grid axis.
    out = upsample3d_forward(x, weight, bias, block_h=8)
    out = jax.block_until_ready(out)

    ref = _reference(x, weight, bias)
    assert out.shape == (b, out_channels, f, 2 * h, 2 * w)
    assert jnp.allclose(out, ref, atol=1e-4, rtol=1e-4), "mismatch vs reference"

    # TODO(synk): use_conv_transpose=True raises NotImplementedError in the
    # reference module, so it is intentionally not implemented here.
    # TODO(synk): the output_size= override of F.interpolate (arbitrary target
    # size) is not implemented; only scale_factor=[1, 2, 2] is supported.
    print("KERNEL_OK")
</pallas_src>

<mosaic_0001>
module attributes {stable_mosaic.version = 11 : i64} {
  func.func @_upsample_conv_kernel(%arg0: i32, %arg1: i32, %arg2: i32, %arg3: memref<1x10x10x4xf32, #tpu.memory_space<vmem>>, %arg4: memref<16x4x4xf32, #tpu.memory_space<vmem>>, %arg5: memref<1x4xf32, #tpu.memory_space<vmem>>, %arg6: memref<1x8x16x4xf32, #tpu.memory_space<vmem>>) attributes {dimension_semantics = [#tpu.dimension_semantics<parallel>, #tpu.dimension_semantics<arbitrary>, #tpu.dimension_semantics<arbitrary>], iteration_bounds = array<i64: 8, 2, 1>, scalar_prefetch = 0 : i64, scratch_operands = 0 : i64, tpu.core_type = #tpu.core_type<tc>, window_params = [{transform_indices = @transform_0, window_bounds = array<i64: 1, 10, 10, 4>}, {transform_indices = @transform_1, window_bounds = array<i64: 16, 4, 4>}, {transform_indices = @transform_2, window_bounds = array<i64: 1, 4>}, {transform_indices = @transform_3, window_bounds = array<i64: 1, 8, 16, 4>}]} {
    %c4_i32 = arith.constant 4 : i32
    %0 = arith.muli %arg1, %c4_i32 : i32
    %1 = tpu.assume_multiple %0, 4 : i32
    %c0 = arith.constant 0 : index
    %2 = arith.index_cast %1 : i32 to index
    %c0_0 = arith.constant 0 : index
    %c0_1 = arith.constant 0 : index
    %3 = vector.load %arg3[%c0, %2, %c0_0, %c0_1] : memref<1x10x10x4xf32, #tpu.memory_space<vmem>>, vector<1x6x10x4xf32>
    %4 = vector.shape_cast %3 : vector<1x6x10x4xf32> to vector<6x10x4xf32>
    %5 = vector.extract_strided_slice %4 {offsets = [0, 0, 0], sizes = [6, 8, 4], strides = [1, 1, 1]} : vector<6x10x4xf32> to vector<6x8x4xf32>
    %6 = vector.extract_strided_slice %4 {offsets = [0, 1, 0], sizes = [6, 8, 4], strides = [1, 1, 1]} : vector<6x10x4xf32> to vector<6x8x4xf32>
    %7 = vector.extract_strided_slice %4 {offsets = [0, 2, 0], sizes = [6, 8, 4], strides = [1, 1, 1]} : vector<6x10x4xf32> to vector<6x8x4xf32>
    %c0_2 = arith.constant 0 : index
    %c0_3 = arith.constant 0 : index
    %8 = vector.load %arg5[%c0_2, %c0_3] : memref<1x4xf32, #tpu.memory_space<vmem>>, vector<1x4xf32>
    %9 = vector.shape_cast %8 : vector<1x4xf32> to vector<1x4xf32>
    %10 = vector.broadcast %9 : vector<1x4xf32> to vector<32x4xf32>
    %11 = vector.extract_strided_slice %5 {offsets = [0, 0, 0], sizes = [4, 8, 4], strides = [1, 1, 1]} : vector<6x8x4xf32> to vector<4x8x4xf32>
    %12 = vector.shape_cast %11 : vector<4x8x4xf32> to vector<32x4xf32>
    %c0_4 = arith.constant 0 : index
    %c0_5 = arith.constant 0 : index
    %c0_6 = arith.constant 0 : index
    %13 = vector.load %arg4[%c0_4, %c0_5, %c0_6] : memref<16x4x4xf32, #tpu.memory_space<vmem>>, vector<1x4x4xf32>
    %14 = vector.shape_cast %13 : vector<1x4x4xf32> to vector<4x4xf32>
    %cst = arith.constant dense<0.000000e+00> : vector<32x4xf32>
    %15 = tpu.matmul %12, %14, %cst {dimension_numbers = #tpu.dot_dimension_numbers<[1], [0], [0], [1], [0, 0, 1, 1], [], []>} : vector<32x4xf32>, vector<4x4xf32>, vector<32x4xf32> -> vector<32x4xf32>
    %16 = arith.addf %10, %15 : vector<32x4xf32>
    %17 = vector.extract_strided_slice %6 {offsets = [0, 0, 0], sizes = [4, 8, 4], strides = [1, 1, 1]} : vector<6x8x4xf32> to vector<4x8x4xf32>
    %18 = vector.shape_cast %17 : vector<4x8x4xf32> to vector<32x4xf32>
    %c1 = arith.constant 1 : index
    %c0_7 = arith.constant 0 : index
    %c0_8 = arith.constant 0 : index
    %19 = vector.load %arg4[%c1, %c0_7, %c0_8] : memref<16x4x4xf32, #tpu.memory_space<vmem>>, vector<1x4x4xf32>
    %20 = vector.shape_cast %19 : vector<1x4x4xf32> to vector<4x4xf32>
    %cst_9 = arith.constant dense<0.000000e+00> : vector<32x4xf32>
    %21 = tpu.matmul %18, %20, %cst_9 {dimension_numbers = #tpu.dot_dimension_numbers<[1], [0], [0], [1], [0, 0, 1, 1], [], []>} : vector<32x4xf32>, vector<4x4xf32>, vector<32x4xf32> -> vector<32x4xf32>
    %22 = arith.addf %16, %21 : vector<32x4xf32>
    %23 = vector.extract_strided_slice %5 {offsets = [1, 0, 0], sizes = [4, 8, 4], strides = [1, 1, 1]} : vector<6x8x4xf32> to vector<4x8x4xf32>
    %24 = vector.shape_cast %23 : vector<4x8x4xf32> to vector<32x4xf32>
    %c2 = arith.constant 2 : index
    %c0_10 = arith.constant 0 : index
    %c0_11 = arith.constant 0 : index
    %25 = vector.load %arg4[%c2, %c0_10, %c0_11] : memref<16x4x4xf32, #tpu.memory_space<vmem>>, vector<1x4x4xf32>
    %26 = vector.shape_cast %25 : vector<1x4x4xf32> to vector<4x4xf32>
    %cst_12 = arith.constant dense<0.000000e+00> : vector<32x4xf32>
    %27 = tpu.matmul %24, %26, %cst_12 {dimension_numbers = #tpu.dot_dimension_numbers<[1], [0], [0], [1], [0, 0, 1, 1], [], []>} : vector<32x4xf32>, vector<4x4xf32>, vector<32x4xf32> -> vector<32x4xf32>
    %28 = arith.addf %22, %27 : vector<32x4xf32>
    %29 = vector.extract_strided_slice %6 {offsets = [1, 0, 0], sizes = [4, 8, 4], strides = [1, 1, 1]} : vector<6x8x4xf32> to vector<4x8x4xf32>
    %30 = vector.shape_cast %29 : vector<4x8x4xf32> to vector<32x4xf32>
    %c3 = arith.constant 3 : index
    %c0_13 = arith.constant 0 : index
    %c0_14 = arith.constant 0 : index
    %31 = vector.load %arg4[%c3, %c0_13, %c0_14] : memref<16x4x4xf32, #tpu.memory_space<vmem>>, vector<1x4x4xf32>
    %32 = vector.shape_cast %31 : vector<1x4x4xf32> to vector<4x4xf32>
    %cst_15 = arith.constant dense<0.000000e+00> : vector<32x4xf32>
    %33 = tpu.matmul %30, %32, %cst_15 {dimension_numbers = #tpu.dot_dimension_numbers<[1], [0], [0], [1], [0, 0, 1, 1], [], []>} : vector<32x4xf32>, vector<4x4xf32>, vector<32x4xf32> -> vector<32x4xf32>
    %34 = arith.addf %28, %33 : vector<32x4xf32>
    %35 = vector.shape_cast %34 : vector<32x4xf32> to vector<4x8x4xf32>
    %36 = vector.extract_strided_slice %6 {offsets = [0, 0, 0], sizes = [4, 8, 4], strides = [1, 1, 1]} : vector<6x8x4xf32> to vector<4x8x4xf32>
    %37 = vector.shape_cast %36 : vector<4x8x4xf32> to vector<32x4xf32>
    %c4 = arith.constant 4 : index
    %c0_16 = arith.constant 0 : index
    %c0_17 = arith.constant 0 : index
    %38 = vector.load %arg4[%c4, %c0_16, %c0_17] : memref<16x4x4xf32, #tpu.memory_space<vmem>>, vector<1x4x4xf32>
    %39 = vector.shape_cast %38 : vector<1x4x4xf32> to vector<4x4xf32>
    %cst_18 = arith.constant dense<0.000000e+00> : vector<32x4xf32>
    %40 = tpu.matmul %37, %39, %cst_18 {dimension_numbers = #tpu.dot_dimension_numbers<[1], [0], [0], [1], [0, 0, 1, 1], [], []>} : vector<32x4xf32>, vector<4x4xf32>, vector<32x4xf32> -> vector<32x4xf32>
    %41 = arith.addf %10, %40 : vector<32x4xf32>
    %42 = vector.extract_strided_slice %7 {offsets = [0, 0, 0], sizes = [4, 8, 4], strides = [1, 1, 1]} : vector<6x8x4xf32> to vector<4x8x4xf32>
    %43 = vector.shape_cast %42 : vector<4x8x4xf32> to vector<32x4xf32>
    %c5 = arith.constant 5 : index
    %c0_19 = arith.constant 0 : index
    %c0_20 = arith.constant 0 : index
    %44 = vector.load %arg4[%c5, %c0_19, %c0_20] : memref<16x4x4xf32, #tpu.memory_space<vmem>>, vector<1x4x4xf32>
    %45 = vector.shape_cast %44 : vector<1x4x4xf32> to vector<4x4xf32>
    %cst_21 = arith.constant dense<0.000000e+00> : vector<32x4xf32>
    %46 = tpu.matmul %43, %45, %cst_21 {dimension_numbers = #tpu.dot_dimension_numbers<[1], [0], [0], [1], [0, 0, 1, 1], [], []>} : vector<32x4xf32>, vector<4x4xf32>, vector<32x4xf32> -> vector<32x4xf32>
    %47 = arith.addf %41, %46 : vector<32x4xf32>
    %48 = vector.extract_strided_slice %6 {offsets = [1, 0, 0], sizes = [4, 8, 4], strides = [1, 1, 1]} : vector<6x8x4xf32> to vector<4x8x4xf32>
    %49 = vector.shape_cast %48 : vector<4x8x4xf32> to vector<32x4xf32>
    %c6 = arith.constant 6 : index
    %c0_22 = arith.constant 0 : index
    %c0_23 = arith.constant 0 : index
    %50 = vector.load %arg4[%c6, %c0_22, %c0_23] : memref<16x4x4xf32, #tpu.memory_space<vmem>>, vector<1x4x4xf32>
    %51 = vector.shape_cast %50 : vector<1x4x4xf32> to vector<4x4xf32>
    %cst_24 = arith.constant dense<0.000000e+00> : vector<32x4xf32>
    %52 = tpu.matmul %49, %51, %cst_24 {dimension_numbers = #tpu.dot_dimension_numbers<[1], [0], [0], [1], [0, 0, 1, 1], [], []>} : vector<32x4xf32>, vector<4x4xf32>, vector<32x4xf32> -> vector<32x4xf32>
    %53 = arith.addf %47, %52 : vector<32x4xf32>
    %54 = vector.extract_strided_slice %7 {offsets = [1, 0, 0], sizes = [4, 8, 4], strides = [1, 1, 1]} : vector<6x8x4xf32> to vector<4x8x4xf32>
    %55 = vector.shape_cast %54 : vector<4x8x4xf32> to vector<32x4xf32>
    %c7 = arith.constant 7 : index
    %c0_25 = arith.constant 0 : index
    %c0_26 = arith.constant 0 : index
    %56 = vector.load %arg4[%c7, %c0_25, %c0_26] : memref<16x4x4xf32, #tpu.memory_space<vmem>>, vector<1x4x4xf32>
    %57 = vector.shape_cast %56 : vector<1x4x4xf32> to vector<4x4xf32>
    %cst_27 = arith.constant dense<0.000000e+00> : vector<32x4xf32>
    %58 = tpu.matmul %55, %57, %cst_27 {dimension_numbers = #tpu.dot_dimension_numbers<[1], [0], [0], [1], [0, 0, 1, 1], [], []>} : vector<32x4xf32>, vector<4x4xf32>, vector<32x4xf32> -> vector<32x4xf32>
    %59 = arith.addf %53, %58 : vector<32x4xf32>
    %60 = vector.shape_cast %59 : vector<32x4xf32> to vector<4x8x4xf32>
    %61 = vector.shape_cast %35 : vector<4x8x4xf32> to vector<4x8x1x4xf32>
    %62 = vector.shape_cast %60 : vector<4x8x4xf32> to vector<4x8x1x4xf32>
    %63 = tpu.concatenate %61, %62 in 2 : vector<4x8x1x4xf32>, vector<4x8x1x4xf32> -> vector<4x8x2x4xf32>
    %64 = vector.shape_cast %63 : vector<4x8x2x4xf32> to vector<4x16x4xf32>
    %65 = vector.extract_strided_slice %5 {offsets = [1, 0, 0], sizes = [4, 8, 4], strides = [1, 1, 1]} : vector<6x8x4xf32> to vector<4x8x4xf32>
    %66 = vector.shape_cast %65 : vector<4x8x4xf32> to vector<32x4xf32>
    %c8 = arith.constant 8 : index
    %c0_28 = arith.constant 0 : index
    %c0_29 = arith.constant 0 : index
    %67 = vector.load %arg4[%c8, %c0_28, %c0_29] : memref<16x4x4xf32, #tpu.memory_space<vmem>>, vector<1x4x4xf32>
    %68 = vector.shape_cast %67 : vector<1x4x4xf32> to vector<4x4xf32>
    %cst_30 = arith.constant dense<0.000000e+00> : vector<32x4xf32>
    %69 = tpu.matmul %66, %68, %cst_30 {dimension_numbers = #tpu.dot_dimension_numbers<[1], [0], [0], [1], [0, 0, 1, 1], [], []>} : vector<32x4xf32>, vector<4x4xf32>, vector<32x4xf32> -> vector<32x4xf32>
    %70 = arith.addf %10, %69 : vector<32x4xf32>
    %71 = vector.extract_strided_slice %6 {offsets = [1, 0, 0], sizes = [4, 8, 4], strides = [1, 1, 1]} : vector<6x8x4xf32> to vector<4x8x4xf32>
    %72 = vector.shape_cast %71 : vector<4x8x4xf32> to vector<32x4xf32>
    %c9 = arith.constant 9 : index
    %c0_31 = arith.constant 0 : index
    %c0_32 = arith.constant 0 : index
    %73 = vector.load %arg4[%c9, %c0_31, %c0_32] : memref<16x4x4xf32, #tpu.memory_space<vmem>>, vector<1x4x4xf32>
    %74 = vector.shape_cast %73 : vector<1x4x4xf32> to vector<4x4xf32>
    %cst_33 = arith.constant dense<0.000000e+00> : vector<32x4xf32>
    %75 = tpu.matmul %72, %74, %cst_33 {dimension_numbers = #tpu.dot_dimension_numbers<[1], [0], [0], [1], [0, 0, 1, 1], [], []>} : vector<32x4xf32>, vector<4x4xf32>, vector<32x4xf32> -> vector<32x4xf32>
    %76 = arith.addf %70, %75 : vector<32x4xf32>
    %77 = vector.extract_strided_slice %5 {offsets = [2, 0, 0], sizes = [4, 8, 4], strides = [1, 1, 1]} : vector<6x8x4xf32> to vector<4x8x4xf32>
    %78 = vector.shape_cast %77 : vector<4x8x4xf32> to vector<32x4xf32>
    %c10 = arith.constant 10 : index
    %c0_34 = arith.constant 0 : index
    %c0_35 = arith.constant 0 : index
    %79 = vector.load %arg4[%c10, %c0_34, %c0_35] : memref<16x4x4xf32, #tpu.memory_space<vmem>>, vector<1x4x4xf32>
    %80 = vector.shape_cast %79 : vector<1x4x4xf32> to vector<4x4xf32>
    %cst_36 = arith.constant dense<0.000000e+00> : vector<32x4xf32>
    %81 = tpu.matmul %78, %80, %cst_36 {dimension_numbers = #tpu.dot_dimension_numbers<[1], [0], [0], [1], [0, 0, 1, 1], [], []>} : vector<32x4xf32>, vector<4x4xf32>, vector<32x4xf32> -> vector<32x4xf32>
    %82 = arith.addf %76, %81 : vector<32x4xf32>
    %83 = vector.extract_strided_slice %6 {offsets = [2, 0, 0], sizes = [4, 8, 4], strides = [1, 1, 1]} : vector<6x8x4xf32> to vector<4x8x4xf32>
    %84 = vector.shape_cast %83 : vector<4x8x4xf32> to vector<32x4xf32>
    %c11 = arith.constant 11 : index
    %c0_37 = arith.constant 0 : index
    %c0_38 = arith.constant 0 : index
    %85 = vector.load %arg4[%c11, %c0_37, %c0_38] : memref<16x4x4xf32, #tpu.memory_space<vmem>>, vector<1x4x4xf32>
    %86 = vector.shape_cast %85 : vector<1x4x4xf32> to vector<4x4xf32>
    %cst_39 = arith.constant dense<0.000000e+00> : vector<32x4xf32>
    %87 = tpu.matmul %84, %86, %cst_39 {dimension_numbers = #tpu.dot_dimension_numbers<[1], [0], [0], [1], [0, 0, 1, 1], [], []>} : vector<32x4xf32>, vector<4x4xf32>, vector<32x4xf32> -> vector<32x4xf32>
    %88 = arith.addf %82, %87 : vector<32x4xf32>
    %89 = vector.shape_cast %88 : vector<32x4xf32> to vector<4x8x4xf32>
    %90 = vector.extract_strided_slice %6 {offsets = [1, 0, 0], sizes = [4, 8, 4], strides = [1, 1, 1]} : vector<6x8x4xf32> to vector<4x8x4xf32>
    %91 = vector.shape_cast %90 : vector<4x8x4xf32> to vector<32x4xf32>
    %c12 = arith.constant 12 : index
    %c0_40 = arith.constant 0 : index
    %c0_41 = arith.constant 0 : index
    %92 = vector.load %arg4[%c12, %c0_40, %c0_41] : memref<16x4x4xf32, #tpu.memory_space<vmem>>, vector<1x4x4xf32>
    %93 = vector.shape_cast %92 : vector<1x4x4xf32> to vector<4x4xf32>
    %cst_42 = arith.constant dense<0.000000e+00> : vector<32x4xf32>
    %94 = tpu.matmul %91, %93, %cst_42 {dimension_numbers = #tpu.dot_dimension_numbers<[1], [0], [0], [1], [0, 0, 1, 1], [], []>} : vector<32x4xf32>, vector<4x4xf32>, vector<32x4xf32> -> vector<32x4xf32>
    %95 = arith.addf %10, %94 : vector<32x4xf32>
    %96 = vector.extract_strided_slice %7 {offsets = [1, 0, 0], sizes = [4, 8, 4], strides = [1, 1, 1]} : vector<6x8x4xf32> to vector<4x8x4xf32>
    %97 = vector.shape_cast %96 : vector<4x8x4xf32> to vector<32x4xf32>
    %c13 = arith.constant 13 : index
    %c0_43 = arith.constant 0 : index
    %c0_44 = arith.constant 0 : index
    %98 = vector.load %arg4[%c13, %c0_43, %c0_44] : memref<16x4x4xf32, #tpu.memory_space<vmem>>, vector<1x4x4xf32>
    %99 = vector.shape_cast %98 : vector<1x4x4xf32> to vector<4x4xf32>
    %cst_45 = arith.constant dense<0.000000e+00> : vector<32x4xf32>
    %100 = tpu.matmul %97, %99, %cst_45 {dimension_numbers = #tpu.dot_dimension_numbers<[1], [0], [0], [1], [0, 0, 1, 1], [], []>} : vector<32x4xf32>, vector<4x4xf32>, vector<32x4xf32> -> vector<32x4xf32>
    %101 = arith.addf %95, %100 : vector<32x4xf32>
    %102 = vector.extract_strided_slice %6 {offsets = [2, 0, 0], sizes = [4, 8, 4], strides = [1, 1, 1]} : vector<6x8x4xf32> to vector<4x8x4xf32>
    %103 = vector.shape_cast %102 : vector<4x8x4xf32> to vector<32x4xf32>
    %c14 = arith.constant 14 : index
    %c0_46 = arith.constant 0 : index
    %c0_47 = arith.constant 0 : index
    %104 = vector.load %arg4[%c14, %c0_46, %c0_47] : memref<16x4x4xf32, #tpu.memory_space<vmem>>, vector<1x4x4xf32>
    %105 = vector.shape_cast %104 : vector<1x4x4xf32> to vector<4x4xf32>
    %cst_48 = arith.constant dense<0.000000e+00> : vector<32x4xf32>
    %106 = tpu.matmul %103, %105, %cst_48 {dimension_numbers = #tpu.dot_dimension_numbers<[1], [0], [0], [1], [0, 0, 1, 1], [], []>} : vector<32x4xf32>, vector<4x4xf32>, vector<32x4xf32> -> vector<32x4xf32>
    %107 = arith.addf %101, %106 : vector<32x4xf32>
    %108 = vector.extract_strided_slice %7 {offsets = [2, 0, 0], sizes = [4, 8, 4], strides = [1, 1, 1]} : vector<6x8x4xf32> to vector<4x8x4xf32>
    %109 = vector.shape_cast %108 : vector<4x8x4xf32> to vector<32x4xf32>
    %c15 = arith.constant 15 : index
    %c0_49 = arith.constant 0 : index
    %c0_50 = arith.constant 0 : index
    %110 = vector.load %arg4[%c15, %c0_49, %c0_50] : memref<16x4x4xf32, #tpu.memory_space<vmem>>, vector<1x4x4xf32>
    %111 = vector.shape_cast %110 : vector<1x4x4xf32> to vector<4x4xf32>
    %cst_51 = arith.constant dense<0.000000e+00> : vector<32x4xf32>
    %112 = tpu.matmul %109, %111, %cst_51 {dimension_numbers = #tpu.dot_dimension_numbers<[1], [0], [0], [1], [0, 0, 1, 1], [], []>} : vector<32x4xf32>, vector<4x4xf32>, vector<32x4xf32> -> vector<32x4xf32>
    %113 = arith.addf %107, %112 : vector<32x4xf32>
    %114 = vector.shape_cast %113 : vector<32x4xf32> to vector<4x8x4xf32>
    %115 = vector.shape_cast %89 : vector<4x8x4xf32> to vector<4x8x1x4xf32>
    %116 = vector.shape_cast %114 : vector<4x8x4xf32> to vector<4x8x1x4xf32>
    %117 = tpu.concatenate %115, %116 in 2 : vector<4x8x1x4xf32>, vector<4x8x1x4xf32> -> vector<4x8x2x4xf32>
    %118 = vector.shape_cast %117 : vector<4x8x2x4xf32> to vector<4x16x4xf32>
    %119 = vector.shape_cast %64 : vector<4x16x4xf32> to vector<4x1x16x4xf32>
    %120 = vector.shape_cast %118 : vector<4x16x4xf32> to vector<4x1x16x4xf32>
    %121 = tpu.concatenate %119, %120 in 1 : vector<4x1x16x4xf32>, vector<4x1x16x4xf32> -> vector<4x2x16x4xf32>
    %122 = vector.shape_cast %121 : vector<4x2x16x4xf32> to vector<8x16x4xf32>
    %c0_52 = arith.constant 0 : index
    %c0_53 = arith.constant 0 : index
    %c0_54 = arith.constant 0 : index
    %c0_55 = arith.constant 0 : index
    %123 = vector.load %arg6[%c0_52, %c0_53, %c0_54, %c0_55] : memref<1x8x16x4xf32, #tpu.memory_space<vmem>>, vector<1x8x16x4xf32>
    %124 = vector.shape_cast %123 : vector<1x8x16x4xf32> to vector<8x16x4xf32>
    %125 = vector.shape_cast %122 : vector<8x16x4xf32> to vector<1x8x16x4xf32>
    tpu.vector_store %arg6[%c0_52, %c0_53, %c0_54, %c0_55], %125 {strides = array<i32>} : memref<1x8x16x4xf32, #tpu.memory_space<vmem>>, vector<1x8x16x4xf32>,
    return
  }
  func.func @transform_0(%arg0: i32, %arg1: i32, %arg2: i32) -> (i32, i32, i32, i32) {
    %c0_i32 = arith.constant 0 : i32
    %c0_i32_0 = arith.constant 0 : i32
    %c0_i32_1 = arith.constant 0 : i32
    %c0_i32_2 = arith.constant 0 : i32
    return %arg0, %c0_i32, %c0_i32_0, %c0_i32_1 : i32, i32, i32, i32
  }
  func.func @transform_1(%arg0: i32, %arg1: i32, %arg2: i32) -> (i32, i32, i32) {
    %c0_i32 = arith.constant 0 : i32
    %c0_i32_0 = arith.constant 0 : i32
    %c0_i32_1 = arith.constant 0 : i32
    return %c0_i32, %c0_i32_0, %arg2 : i32, i32, i32
  }
  func.func @transform_2(%arg0: i32, %arg1: i32, %arg2: i32) -> (i32, i32) {
    %c0_i32 = arith.constant 0 : i32
    %c0_i32_0 = arith.constant 0 : i32
    return %c0_i32, %arg2 : i32, i32
  }
  func.func @transform_3(%arg0: i32, %arg1: i32, %arg2: i32) -> (i32, i32, i32, i32) {
    %c0_i32 = arith.constant 0 : i32
    %c0_i32_0 = arith.constant 0 : i32
    return %arg0, %arg1, %c0_i32, %arg2 : i32, i32, i32, i32
  }
}

</mosaic_0001>

<bundles_post_ra>
// kernel: tpu_custom_call.1
= control target key start
LH: loop header
LB: loop body
LE: loop exit
PB: predicated region body
PF: predicated region fallthrough
CT: control target
= control target key end

     0   :  { %s4094_s12 = smov 0   ;;  %s4096_s13 = smov 0   ;;  %s4937_s0 = inlined_call_operand.vmem [shape: f32[8,10,10,4], index: 0, kind: input, shape index: {}]   ;;  %s4938_s1 = inlined_call_operand.vmem [shape: f32[16,4,4], index: 1, kind: input, shape index: {}]   ;;  %s4939_s2 = inlined_call_operand.vmem [shape: f32[1,4], index: 2, kind: input, shape index: {}]   ;;  %s4940_s3 = inlined_call_operand.vmem [shape: f32[8,16,16,4], index: 3, kind: output, shape index: {}]  }
   0x1   :  { %s4098_s14 = smov 0   ;;  %s4100_s15 = smov 0  }
   0x2   :  { %s4102_s16 = smov 0  }
   0x3 LB: > { %s28_s17 = sadd.s32 1, %s4062_s14  ;;  %s32_s18 = sadd.s32 1, %s4066_s15  ;;  %s4070_s16 = sphi %s4102_s16, %s13_s16   ;;  %s4066_s15 = sphi %s4100_s15, %s4945_s15   ;;  %s4062_s14 = sphi %s4098_s14, %s4944_s14   ;;  %s4058_s13 = sphi %s4096_s13, %s4943_s13   ;;  %s4054_s12 = sphi %s4094_s12, %s4942_s12  }
   0x4   : > { %p30_p0 = scmp.ge.s32.totalorder %s28_s17, 2  ;;  %p3610_p1 = scmp.ge.s32.totalorder %s4070_s16, 1 }
   0x5   : > { %p177_p2 = scmp.lt.s32.totalorder %s4070_s16, 17 }
   0x6   : > { %s4947_s17 = smov (%p30_p0, %s28_s17), 0  ;;  %s4949_s18 = smov (!%p30_p0, %s32_s18), %s4066_s15 }
   0x7   : > { %p178_p3 = pnand %p3610_p1, %p177_p2  ;;  %p34_p4 = scmp.ge.s32.totalorder %s4949_s18, 8 }
   0x8   : > { %v264_v0 = vld [vmem:[%s4938_s1] sm:$0xf] (!%p178_p3)  ;;  %vm278_vm0 = vcmask (!%p178_p3), 1043456   ;;  %p216_p5 = scmp.lt.s32.totalorder (!%p178_p3), %s4058_s13, 7  ;;  %v3642_v1 = vld [vmem:[%s4938_s1 + $0x10] sm:$0xf] (!%p178_p3) }
   0x9   : > { %s4951_s18 = smov (%p34_p4, %s4949_s18), 0  ;;  %181 = sbr.rel (%p178_p3) target bundleno = 375 (0x177), region = 32 }
   0xa   : > { %3797 = vmatprep.subr.msk.mxu0 (!%p178_p3), %vm278_vm0, %v264_v0  ;;  %3829 = vmatprep.subr.msk.mxu1 (!%p178_p3), %vm278_vm0, %v3642_v1  ;;  %v3648_v2 = vld [vmem:[%s4938_s1 + $0x14] sm:$0xf] (!%p178_p3)  ;;  %v3624_v3 = vld [vmem:[%s4938_s1 + $0x4] sm:$0xf] (!%p178_p3)  ;;  %s3716_s28 = sshll.u32 (!%p178_p3), %s4054_s12, 6  ;;  %vm265_vm1 = vcmask (!%p178_p3), 31744  }
   0xb   : > { %3798 = vmatpush3.msk.msra.mxu0 (!%p178_p3), %vm278_vm0, %v264_v0  ;;  %3830 = vmatpush3.msk.msra.mxu1 (!%p178_p3), %vm278_vm0, %v3642_v1  ;;  %vm375_vm2 = vcmask (!%p178_p3), 1046528   ;;  %v3630_v11 = vld [vmem:[%s4938_s1 + $0x8] sm:$0xf] (!%p178_p3)  ;;  %vm781_vm3 = vcmask (!%p178_p3), 1045504   ;;  %v3654_v25 = vld [vmem:[%s4938_s1 + $0x18] sm:$0xf] (!%p178_p3) }
   0xc   : > { %3805 = vmatprep.subr.msk.mxu0 (!%p178_p3), %vm278_vm0, %v3624_v3  ;;  %3837 = vmatprep.subr.msk.mxu1 (!%p178_p3), %vm278_vm0, %v3648_v2  ;;  %v3636_v33 = vld [vmem:[%s4938_s1 + $0xc] sm:$0xf] (!%p178_p3)  ;;  %v3660_v38 = vld [vmem:[%s4938_s1 + $0x1c] sm:$0xf] (!%p178_p3)  ;;  %v3666_v42 = vld [vmem:[%s4938_s1 + $0x20] sm:$0xf] (!%p178_p3) }
   0xd   : > { %v3690_v45 = vld [vmem:[%s4938_s1 + $0x30] sm:$0xf] (!%p178_p3)  ;;  %v3672_v47 = vld [vmem:[%s4938_s1 + $0x24] sm:$0xf] (!%p178_p3)  ;;  %v3696_v50 = vld [vmem:[%s4938_s1 + $0x34] sm:$0xf] (!%p178_p3) }
   0xe   : > { %v3678_v52 = vld [vmem:[%s4938_s1 + $0x28] sm:$0xf] (!%p178_p3)  ;;  %v3702_v53 = vld [vmem:[%s4938_s1 + $0x38] sm:$0xf] (!%p178_p3)  ;;  %v3684_v54 = vld [vmem:[%s4938_s1 + $0x2c] sm:$0xf] (!%p178_p3) }
   0xf   : > { %v3708_v55 = vld [vmem:[%s4938_s1 + $0x3c] sm:$0xf] (!%p178_p3)  ;;  %v4072_v0 = vmov (!%p178_p3), 1966171168   ;;  %s3612_s19 = sshll.u32 (!%p178_p3), %s4054_s12, 3  ;;  %vm1681_vm4 = vcmask (!%p178_p3), 1040384  }
  0x10   : > { %s4953_s13 = smov (!%p216_p5, %s4058_s13), 7  ;;  %v1095_v1 = vunpack.c.l.s4 %v4072_v0  ;;  %p4416_p6 = scmp.lt.s32.totalorder %s3612_s19, 15 }
  0x11   : > { %s3989_s27 = smul.u32 160, %s4953_s13  ;;  %s3614_s21 = sshll.u32 %s4953_s13, 5 }
  0x12   : > { %s4955_s19 = smov (!%p4416_p6, %s3612_s19), 15 }
  0x13   : > { %s220_s4 = scalar_lea.vmem %s4937_s0, %s3989_s27  ;;  %s3613_s12 = sshll.u32 %s4955_s19, 1 }
  0x14   : > { %s4151_s5 = scalar_lea.vmem %s220_s4, %s3716_s28  ;;  %s238_s13 = sadd.s32 %s3614_s21, %s3613_s12 }
  0x15   : > { %v245_v4 = vld [vmem:[%s4151_s5] sm:$0xff]  ;;  %v4155_v5 = vld [vmem:[%s4151_s5 + $0x10] sm:$0xff]  ;;  %v246_v6 = vld [vmem:[%s4151_s5 + $0x8] sm:$0x3]  ;;  %s3615_s22 = sshll.u32 %s238_s13, 3 }
  0x16   : > { %3799 = vmatprep.mubr.msk.f32.mxu0 %vm265_vm1, %v245_v4  ;;  %v376_v7 = vrot.slane %v245_v4, 1  ;;  %v379_v8 = vrot.slane %v4155_v5, 1  ;;  %v4161_v9 = vld [vmem:[%s4151_s5 + $0x20] sm:$0xff]  ;;  %v4164_v10 = vld [vmem:[%s4151_s5 + $0x30] sm:$0xff]  ;;  %v782_v12 = vrot.slane %v245_v4, 2  ;;  %v377_v13 = vrot.slane %v246_v6, 1  ;;  %s4507_s25 = scalar_lea.vmem %s4940_s3, %s3615_s22 }
  0x17   : > { %3800 = vmatmul.mubr.msk.f32.vlgmr.msra.gmra.mrb[0].mxu0 %vm265_vm1, %v4155_v5  ;;  %v382_v14 = vrot.slane %v4161_v9, 1  ;;  %v248_v15 = vld [vmem:[%s4151_s5 + $0x18] sm:$0x3]  ;;  %v385_v17 = vrot.slane %v4164_v10, 1  ;;  %v250_v18 = vld [vmem:[%s4151_s5 + $0x28] sm:$0x3] }
  0x18   : > { %3802 = vmatprep.mubr.msk.f32.mxu0 %vm265_vm1, %v4161_v9  ;;  %v380_v16 = vrot.slane %v248_v15, 1  ;;  %3806 = vmatpush3.msk.msra.mxu0 %vm278_vm0, %v3624_v3  ;;  %v252_v19 = vld [vmem:[%s4151_s5 + $0x38] sm:$0x3]  ;;  %v378_v20 = vsel %vm375_vm2, %v376_v7, %v377_v13  ;;  %v783_v21 = vrot.slane %v246_v6, 2  ;;  %v383_v22 = vrot.slane %v250_v18, 1  ;;  %v4242_v40 = vld [vmem:[%s4151_s5 + $0x40] sm:$0xff] }
  0x19   : > { %v386_v23 = vrot.slane %v252_v19, 1  ;;  %3813 = vmatprep.subr.msk.mxu0 %vm278_vm0, %v3630_v11  ;;  %3831 = vmatprep.mubr.msk.f32.mxu1 %vm265_vm1, %v378_v20  ;;  %v785_v27 = vrot.slane %v4155_v5, 2  ;;  %v786_v29 = vrot.slane %v248_v15, 2  ;;  %v788_v31 = vrot.slane %v4161_v9, 2  ;;  %v254_v41 = vld [vmem:[%s4151_s5 + $0x48] sm:$0x3] }
  0x1a   : > { %v4183_v24 = vsel %vm375_vm2, %v379_v8, %v380_v16  ;;  %v4193_v26 = vsel %vm375_vm2, %v382_v14, %v383_v22  ;;  %v784_v30 = vsel %vm781_vm3, %v782_v12, %v783_v21  ;;  %v789_v32 = vrot.slane %v250_v18, 2  ;;  %v255_v56 = vld [vmem:[%s4151_s5 + $0x50] sm:$0xff]  ;;  %v256_v57 = vld [vmem:[%s4151_s5 + $0x58] sm:$0x3]  ;;  %v4389_v7 = vld [vmem:[%s4939_s2] ss:$0 sm:$0xff] }
  0x1b   : > { %3832 = vmatmul.mubr.msk.f32.vlgmr.msra.gmra.mrb[0].mxu1 %vm265_vm1, %v4183_v24  ;;  %3803 = vmatmul.mubr.msk.f32.gmra.mrb[2].mxu0 %vm265_vm1, %v4164_v10  ;;  %v4200_v28 = vsel %vm375_vm2, %v385_v17, %v386_v23  ;;  %v4217_v34 = vsel %vm781_vm3, %v785_v27, %v786_v29  ;;  %v791_v35 = vrot.slane %v4164_v10, 2  ;;  %v792_v36 = vrot.slane %v252_v19, 2 }
  0x1c   : > { %3838 = vmatpush3.msk.msra.mxu1 %vm278_vm0, %v3648_v2  ;;  %3834 = vmatprep.mubr.msk.f32.mxu1 %vm265_vm1, %v4193_v26  ;;  %v4222_v37 = vsel %vm781_vm3, %v788_v31, %v789_v32  ;;  %v588_v43 = vrot.slane %v4242_v40, 1  ;;  %v589_v44 = vrot.slane %v254_v41, 1  ;;  %v990_v48 = vrot.slane %v4242_v40, 2 }
  0x1d   : > { %3807 = vmatprep.mubr.msk.f32.mxu0 %vm265_vm1, %v378_v20  ;;  %3845 = vmatprep.subr.msk.mxu1 %vm278_vm0, %v3654_v25  ;;  %v4236_v39 = vsel %vm781_vm3, %v791_v35, %v792_v36  ;;  %v991_v49 = vrot.slane %v254_v41, 2  ;;  %v2000_v58 = vrot.slane %v255_v56, 1  ;;  %v2001_v59 = vrot.slane %v256_v57, 1 }
  0x1e   : > { %v4270_v46 = vsel %vm375_vm2, %v588_v43, %v589_v44  ;;  %v2381_v61 = vrot.slane %v255_v56, 2  ;;  %v2382_v62 = vrot.slane %v256_v57, 2  ;;  %v1097_v2 = vlaneseq }
  0x1f   : > { %3835 = vmatmul.mubr.msk.f32.gmra.mrb[2].mxu1 %vm265_vm1, %v4200_v28  ;;  %3808 = vmatmul.mubr.msk.f32.vlgmr.msra.gmra.mrb[0].mxu0 %vm265_vm1, %v4183_v24  ;;  %v992_v51 = vsel %vm781_vm3, %v990_v48, %v991_v49  ;;  %v2002_v60 = vsel %vm375_vm2, %v2000_v58, %v2001_v59  ;;  %v1096_v3 = vunpack.c.0.s8 %v1095_v1 }
  0x20   : > { %3839 = vmatprep.mubr.msk.f32.mxu1 %vm265_vm1, %v784_v30  ;;  %3810 = vmatprep.mubr.msk.f32.mxu0 %vm265_vm1, %v4193_v26  ;;  %v2383_v63 = vsel %vm781_vm3, %v2381_v61, %v2382_v62  ;;  %v1098_v4 = vshrl.u32 %v1097_v2, 7 }
  0x21   : > { %3814 = vmatpush3.msk.msra.mxu0 %vm278_vm0, %v3630_v11 }
  0x22   : > { %3821 = vmatprep.subr.msk.mxu0 %vm278_vm0, %v3636_v33  ;;  %v4391_v8 = vsub.s32 %v1096_v3, %v1098_v4  ;;  %v4398_v19 = vsub.s32 0, %v1098_v4 }
  0x23   : > { %3840 = vmatmul.mubr.msk.f32.vlgmr.msra.gmra.mrb[0].mxu1 %vm265_vm1, %v4217_v34  ;;  %3811 = vmatmul.mubr.msk.f32.gmra.mrb[2].mxu0 %vm265_vm1, %v4200_v28 }
  0x24   : > { %3846 = vmatpush3.msk.msra.mxu1 %vm278_vm0, %v3654_v25  ;;  %3842 = vmatprep.mubr.msk.f32.mxu1 %vm265_vm1, %v4222_v37 }
  0x25   : > { %3815 = vmatprep.mubr.msk.f32.mxu0 %vm265_vm1, %v4155_v5  ;;  %3853 = vmatprep.subr.msk.mxu1 %vm278_vm0, %v3660_v38 }
  0x27   : > { %3843 = vmatmul.mubr.msk.f32.gmra.mrb[2].mxu1 %vm265_vm1, %v4236_v39  ;;  %3816 = vmatmul.mubr.msk.f32.vlgmr.msra.gmra.mrb[0].mxu0 %vm265_vm1, %v4161_v9 }
  0x28   : > { %3847 = vmatprep.mubr.msk.f32.mxu1 %vm265_vm1, %v4183_v24  ;;  %3818 = vmatprep.mubr.msk.f32.mxu0 %vm265_vm1, %v4164_v10 }
  0x29   : > { %3822 = vmatpush3.msk.msra.mxu0 %vm278_vm0, %v3636_v33 }
  0x2a   : > { %3861 = vmatprep.subr.msk.mxu0 %vm278_vm0, %v3666_v42 }
  0x2b   : > { %3848 = vmatmul.mubr.msk.f32.vlgmr.msra.gmra.mrb[0].mxu1 %vm265_vm1, %v4193_v26  ;;  %3819 = vmatmul.mubr.msk.f32.gmra.mrb[2].mxu0 %vm265_vm1, %v4242_v40 }
  0x2c   : > { %3854 = vmatpush3.msk.msra.mxu1 %vm278_vm0, %v3660_v38  ;;  %3850 = vmatprep.mubr.msk.f32.mxu1 %vm265_vm1, %v4200_v28 }
  0x2d   : > { %3823 = vmatprep.mubr.msk.f32.mxu0 %vm265_vm1, %v4183_v24  ;;  %3893 = vmatprep.subr.msk.mxu1 %vm278_vm0, %v3690_v45 }
  0x2f   : > { %3851 = vmatmul.mubr.msk.f32.gmra.mrb[2].mxu1 %vm265_vm1, %v4270_v46  ;;  %3824 = vmatmul.mubr.msk.f32.vlgmr.msra.gmra.mrb[0].mxu0 %vm265_vm1, %v4193_v26 }
  0x30   : > { %3855 = vmatprep.mubr.msk.f32.mxu1 %vm265_vm1, %v4217_v34  ;;  %3826 = vmatprep.mubr.msk.f32.mxu0 %vm265_vm1, %v4200_v28 }
  0x31   : > { %3862 = vmatpush3.msk.msra.mxu0 %vm278_vm0, %v3666_v42 }
  0x32   : > { %3869 = vmatprep.subr.msk.mxu0 %vm278_vm0, %v3672_v47 }
  0x33   : > { %3856 = vmatmul.mubr.msk.f32.vlgmr.msra.gmra.mrb[0].mxu1 %vm265_vm1, %v4222_v37  ;;  %3827 = vmatmul.mubr.msk.f32.gmra.mrb[2].mxu0 %vm265_vm1, %v4270_v46 }
  0x34   : > { %3894 = vmatpush3.msk.msra.mxu1 %vm278_vm0, %v3690_v45  ;;  %3858 = vmatprep.mubr.msk.f32.mxu1 %vm265_vm1, %v4236_v39 }
  0x35   : > { %3863 = vmatprep.mubr.msk.f32.mxu0 %vm265_vm1, %v4155_v5  ;;  %3901 = vmatprep.subr.msk.mxu1 %vm278_vm0, %v3696_v50  ;;  %v4073_v5 = vmov 1983009808  }
  0x36   : > { %v3171_v6 = vunpack.c.l.s4 %v4073_v5 }
  0x37   : > { %3859 = vmatmul.mubr.msk.f32.gmra.mrb[2].mxu1 %vm265_vm1, %v992_v51  ;;  %3864 = vmatmul.mubr.msk.f32.vlgmr.msra.gmra.mrb[4].mxu0 %vm265_vm1, %v4161_v9 }
  0x38   : > { %3895 = vmatprep.mubr.msk.f32.mxu1 %vm265_vm1, %v4183_v24  ;;  %3866 = vmatprep.mubr.msk.f32.mxu0 %vm265_vm1, %v4164_v10 }
  0x39   : > { %3870 = vmatpush3.msk.msra.mxu0 %vm278_vm0, %v3672_v47 }
  0x3a   : > { %3877 = vmatprep.subr.msk.mxu0 %vm278_vm0, %v3678_v52 }
  0x3b   : > { %3896 = vmatmul.mubr.msk.f32.vlgmr.msra.gmra.mrb[4].mxu1 %vm265_vm1, %v4193_v26  ;;  %3867 = vmatmul.mubr.msk.f32.gmra.mrb[6].mxu0 %vm265_vm1, %v4242_v40 }
  0x3c   : > { %3902 = vmatpush3.msk.msra.mxu1 %vm278_vm0, %v3696_v50  ;;  %3898 = vmatprep.mubr.msk.f32.mxu1 %vm265_vm1, %v4200_v28 }
  0x3d   : > { %3871 = vmatprep.mubr.msk.f32.mxu0 %vm265_vm1, %v4183_v24  ;;  %3909 = vmatprep.subr.msk.mxu1 %vm278_vm0, %v3702_v53 }
  0x3f   : > { %3899 = vmatmul.mubr.msk.f32.gmra.mrb[6].mxu1 %vm265_vm1, %v4270_v46  ;;  %3872 = vmatmul.mubr.msk.f32.vlgmr.msra.gmra.mrb[4].mxu0 %vm265_vm1, %v4193_v26 }
  0x40   : > { %3903 = vmatprep.mubr.msk.f32.mxu1 %vm265_vm1, %v4217_v34  ;;  %3874 = vmatprep.mubr.msk.f32.mxu0 %vm265_vm1, %v4200_v28 }
  0x41   : > { %3878 = vmatpush3.msk.msra.mxu0 %vm278_vm0, %v3678_v52 }
  0x42   : > { %3885 = vmatprep.subr.msk.mxu0 %vm278_vm0, %v3684_v54 }
  0x43   : > { %3904 = vmatmul.mubr.msk.f32.vlgmr.msra.gmra.mrb[4].mxu1 %vm265_vm1, %v4222_v37  ;;  %3875 = vmatmul.mubr.msk.f32.gmra.mrb[6].mxu0 %vm265_vm1, %v4270_v46 }
  0x44   : > { %3910 = vmatpush3.msk.msra.mxu1 %vm278_vm0, %v3702_v53  ;;  %3906 = vmatprep.mubr.msk.f32.mxu1 %vm265_vm1, %v4236_v39 }
  0x45   : > { %3879 = vmatprep.mubr.msk.f32.mxu0 %vm265_vm1, %v4161_v9  ;;  %3917 = vmatprep.subr.msk.mxu1 %vm278_vm0, %v3708_v55 }
  0x47   : > { %3907 = vmatmul.mubr.msk.f32.gmra.mrb[6].mxu1 %vm265_vm1, %v992_v51  ;;  %3880 = vmatmul.mubr.msk.f32.vlgmr.msra.gmra.mrb[4].mxu0 %vm265_vm1, %v4164_v10  ;;  %v3172_v10 = vunpack.c.0.s8 %v3171_v6 }
  0x48   : > { %3911 = vmatprep.mubr.msk.f32.mxu1 %vm265_vm1, %v4193_v26  ;;  %3882 = vmatprep.mubr.msk.f32.mxu0 %vm265_vm1, %v4242_v40 }
  0x49   : > { %3886 = vmatpush3.msk.msra.mxu0 %vm278_vm0, %v3684_v54  ;;  %v4400_v20 = vsub.s32 %v3172_v10, %v1098_v4 }
  0x4b   : > { %3912 = vmatmul.mubr.msk.f32.vlgmr.msra.gmra.mrb[4].mxu1 %vm265_vm1, %v4200_v28  ;;  %3883 = vmatmul.mubr.msk.f32.gmra.mrb[6].mxu0 %vm265_vm1, %v255_v56 }
  0x4c   : > { %3918 = vmatpush3.msk.msra.mxu1 %vm278_vm0, %v3708_v55  ;;  %3914 = vmatprep.mubr.msk.f32.mxu1 %vm265_vm1, %v4270_v46 }
  0x4d   : > { %3887 = vmatprep.mubr.msk.f32.mxu0 %vm265_vm1, %v4193_v26 }
  0x4f   : > { %3915 = vmatmul.mubr.msk.f32.gmra.mrb[6].mxu1 %vm265_vm1, %v2002_v60  ;;  %3888 = vmatmul.mubr.msk.f32.vlgmr.msra.gmra.mrb[4].mxu0 %vm265_vm1, %v4200_v28 }
  0x50   : > { %3919 = vmatprep.mubr.msk.f32.mxu1 %vm265_vm1, %v4222_v37  ;;  %3890 = vmatprep.mubr.msk.f32.mxu0 %vm265_vm1, %v4270_v46 }
  0x53   : > { %3920 = vmatmul.mubr.msk.f32.vlgmr.msra.gmra.mrb[4].mxu1 %vm265_vm1, %v4236_v39  ;;  %3891 = vmatmul.mubr.msk.f32.gmra.mrb[6].mxu0 %vm265_vm1, %v2002_v60 }
  0x54   : > { %3922 = vmatprep.mubr.msk.f32.mxu1 %vm265_vm1, %v992_v51 }
  0x57   : > { %3923 = vmatmul.mubr.msk.f32.gmra.mrb[6].mxu1 %vm265_vm1, %v2383_v63 }
 0x102   : > { %v3825_v9 = vpop.f32.mrb[0].mxu0 }
 0x103   : > { %v3925_v11 = vadd.f32 %v3825_v9, %v4389_v7  ;;  %v664_v12 = vpop.f32.mrb[1].mxu0 }
 0x104   : > { %v3926_v13 = vadd.f32 %v4389_v7, %v664_v12 }
 0x105   : > { %v1142_v14 = vcombine.high %v3925_v11, %v3925_v11  ;;  %v1149_v15 = vrot.slane %v3925_v11, %v4391_v8 }
 0x106   : > { %v1093_v16 = vcombine.high %v3926_v13, %v3926_v13  ;;  %v1100_v17 = vrot.slane %v3926_v13, %v4391_v8  ;;  %v3857_v18 = vpop.f32.mrb[0].mxu1  ;;  %v3828_v21 = vpop.f32.mrb[2].mxu0 }
 0x107   : > { %v1156_v22 = vrot.slane %v1142_v14, %v4391_v8  ;;  %v1157_v23 = vcombine.high %v1149_v15, %v1149_v15  ;;  %v4404_v24 = vrot.slane %v1149_v15, %v4391_v8  ;;  %v3929_v25 = vadd.f32 %v3857_v18, %v4389_v7  ;;  %v1066_v26 = vpop.f32.mrb[1].mxu1  ;;  %v4407_v27 = vpop.f32.mrb[3].mxu0 }
 0x108   : > { %v1107_v28 = vrot.slane %v1093_v16, %v4391_v8  ;;  %v1108_v29 = vcombine.high %v1100_v17, %v1100_v17  ;;  %v4411_v30 = vrot.slane %v1100_v17, %v4391_v8  ;;  %v3927_v31 = vadd.f32 %v3828_v21, %v4389_v7 }
 0x109   : > { %v1158_v32 = vcombine.high %v1156_v22, %v1156_v22  ;;  %v1172_v33 = vrot.slane %v1156_v22, %v4391_v8  ;;  %v1179_v34 = vrot.slane %v1157_v23, %v4391_v8  ;;  %v1187_v35 = vcombine.high %v4404_v24, %v4404_v24 }
 0x10a   : > { %v1109_v36 = vcombine.high %v1107_v28, %v1107_v28  ;;  %v4425_v37 = vrot.slane %v1107_v28, %v4391_v8  ;;  %v4428_v38 = vrot.slane %v1108_v29, %v4391_v8  ;;  %v1138_v39 = vcombine.high %v4411_v30, %v4411_v30  ;;  %v4432_v40 = vpop.f32.mrb[2].mxu1 }
 0x10b   : > { %v1186_v41 = vrot.slane %v1158_v32, %v4391_v8  ;;  %v1188_v42 = vcombine.high %v1172_v33, %v1172_v33  ;;  %v1189_v43 = vcombine.high %v1179_v34, %v1179_v34  ;;  %v1374_v44 = vcombine.high %v3929_v25, %v3929_v25  ;;  %v4435_v45 = vpop.f32.mrb[3].mxu1 }
 0x10c   : > { %v4438_v46 = vrot.slane %v1109_v36, %v4391_v8  ;;  %v1139_v47 = vcombine.high %v4425_v37, %v4425_v37  ;;  %v1140_v48 = vcombine.high %v4428_v38, %v4428_v38  ;;  %v1381_v49 = vrot.slane %v3929_v25, %v4391_v8 }
 0x10d   : > { %v1190_v50 = vcombine.high %v1186_v41, %v1186_v41  ;;  %v1388_v51 = vrot.slane %v1374_v44, %v4391_v8  ;;  %v1240_v52 = vcombine.high %v3927_v31, %v3927_v31  ;;  %v1247_v53 = vrot.slane %v3927_v31, %v4391_v8 }
 0x10e   : > { %v1141_v54 = vcombine.high %v4438_v46, %v4438_v46  ;;  %v1389_v55 = vcombine.high %v1381_v49, %v1381_v49  ;;  %v1397_v56 = vrot.slane %v1381_v49, %v4391_v8  ;;  %v3930_v57 = vadd.f32 %v4389_v7, %v1066_v26 }
 0x10f   : > { %v1390_v58 = vcombine.high %v1388_v51, %v1388_v51  ;;  %v1404_v59 = vrot.slane %v1388_v51, %v4391_v8  ;;  %v1254_v60 = vrot.slane %v1240_v52, %v4391_v8  ;;  %v1255_v61 = vcombine.high %v1247_v53, %v1247_v53 }
 0x110   : > { %v1411_v62 = vrot.slane %v1389_v55, %v4391_v8  ;;  %v1419_v63 = vcombine.high %v1397_v56, %v1397_v56  ;;  %v1556_v0 = vrot.slane %v1397_v56, %v4398_v19  ;;  %v4462_v1 = vrot.slane %v1247_v53, %v4391_v8 }
 0x111   : > { %v1418_v2 = vrot.slane %v1390_v58, %v4391_v8  ;;  %v1420_v3 = vcombine.high %v1404_v59, %v1404_v59  ;;  %v1572_v4 = vrot.slane %v1404_v59, %v4398_v19  ;;  %v1256_v5 = vcombine.high %v1254_v60, %v1254_v60 }
 0x112   : > { %v1421_v6 = vcombine.high %v1411_v62, %v1411_v62  ;;  %v1560_v9 = vrot.slane %v1411_v62, %v4398_v19  ;;  %v1564_v10 = vrot.slane %v1419_v63, %v4398_v19  ;;  %v1690_v11 = vsel %vm1681_vm4, %v4404_v24, %v1556_v0 }
 0x113   : > { %v1422_v12 = vcombine.high %v1418_v2, %v1418_v2  ;;  %v1576_v13 = vrot.slane %v1418_v2, %v4398_v19  ;;  %v1580_v14 = vrot.slane %v1420_v3, %v4398_v19  ;;  %v1694_v15 = vsel %vm1681_vm4, %v1172_v33, %v1572_v4 }
 0x114   : > { %v1568_v16 = vrot.slane %v1421_v6, %v4398_v19  ;;  %v1691_v17 = vsel %vm1681_vm4, %v1179_v34, %v1560_v9  ;;  %v1692_v18 = vsel %vm1681_vm4, %v1187_v35, %v1564_v10  ;;  %v4479_v21 = vrot.slane %v1254_v60, %v4391_v8 }
 0x115   : > { %v1584_v22 = vrot.slane %v1422_v12, %v4398_v19  ;;  %v1695_v23 = vsel %vm1681_vm4, %v1186_v41, %v1576_v13  ;;  %v1696_v24 = vsel %vm1681_vm4, %v1188_v42, %v1580_v14  ;;  %v3236_v25 = vcombine.low %v1690_v11, %v1691_v17 }
 0x116   : > { %v1693_v26 = vsel %vm1681_vm4, %v1189_v43, %v1568_v16  ;;  %v3253_v28 = vcombine.low %v1694_v15, %v1695_v23  ;;  %v4486_v29 = vrot.slane %v1255_v61, %v4391_v8  ;;  %v4489_v31 = vrot.slane %v1256_v5, %v4391_v8 }
 0x117   : > { %v1697_v32 = vsel %vm1681_vm4, %v1190_v50, %v1584_v22  ;;  %v3237_v33 = vcombine.low %v1692_v18, %v1693_v26  ;;  %v3244_v34 = vrot.slane %v3236_v25, %v4400_v20  ;;  %v1285_v35 = vcombine.high %v4462_v1, %v4462_v1 }
 0x118   : > { %v3254_v36 = vcombine.low %v1696_v24, %v1697_v32  ;;  %v3261_v41 = vrot.slane %v3253_v28, %v4400_v20  ;;  %v1286_v42 = vcombine.high %v4479_v21, %v4479_v21  ;;  %v1287_v43 = vcombine.high %v4486_v29, %v4486_v29 }
 0x119   : > { %v3251_v44 = vrot.slane %v3237_v33, %v4400_v20  ;;  %v1288_v49 = vcombine.high %v4489_v31, %v4489_v31  ;;  %v1325_v50 = vcombine.high %v3930_v57, %v3930_v57  ;;  %v1332_v51 = vrot.slane %v3930_v57, %v4391_v8 }
 0x11a   : > { %v3268_v52 = vrot.slane %v3254_v36, %v4400_v20  ;;  %v3928_v53 = vadd.f32 %v4389_v7, %v4407_v27  ;;  %v3931_v55 = vadd.f32 %v4432_v40, %v4389_v7  ;;  %v4516_v56 = vadd.f32 %v4389_v7, %v4435_v45 }
 0x11b   : > { %v3252_v57 = vcombine.low %v3244_v34, %v3251_v44  ;;  %v1339_v58 = vrot.slane %v1325_v50, %v4391_v8  ;;  %v1340_v59 = vcombine.high %v1332_v51, %v1332_v51  ;;  %v1348_v60 = vrot.slane %v1332_v51, %v4391_v8 }
 0x11c   : > { %v3269_v61 = vcombine.low %v3261_v41, %v3268_v52  ;;  %v1191_v62 = vcombine.high %v3928_v53, %v3928_v53  ;;  %v1198_v63 = vrot.slane %v3928_v53, %v4391_v8  ;;  %v1472_v0 = vcombine.high %v3931_v55, %v3931_v55 }
 0x11d   : > { %3460 = vst.msk [vmem:[%s4507_s25 + $0x20] sm:$0xff] %vm265_vm1, %v3252_v57  ;;  %v1341_v27 = vcombine.high %v1339_v58, %v1339_v58  ;;  %v1355_v40 = vrot.slane %v1339_v58, %v4391_v8  ;;  %v1362_v2 = vrot.slane %v1340_v59, %v4391_v8  ;;  %v1370_v45 = vcombine.high %v1348_v60, %v1348_v60 }
 0x11e   : > { %3461 = vst.msk [vmem:[%s4507_s25 + $0x28] sm:$0xff] %vm265_vm1, %v3269_v61  ;;  %v1524_v3 = vrot.slane %v1348_v60, %v4398_v19  ;;  %v1205_v4 = vrot.slane %v1191_v62, %v4391_v8  ;;  %v1206_v5 = vcombine.high %v1198_v63, %v1198_v63  ;;  %v4530_v6 = vrot.slane %v1198_v63, %v4391_v8 }
 0x11f   : > { %v1369_v9 = vrot.slane %v1341_v27, %v4391_v8  ;;  %v1371_v10 = vcombine.high %v1355_v40, %v1355_v40  ;;  %v1372_v11 = vcombine.high %v1362_v2, %v1362_v2  ;;  %v1528_v12 = vrot.slane %v1362_v2, %v4398_v19 }
 0x120   : > { %v1532_v13 = vrot.slane %v1370_v45, %v4398_v19  ;;  %v1540_v14 = vrot.slane %v1355_v40, %v4398_v19  ;;  %v1682_v15 = vsel %vm1681_vm4, %v4411_v30, %v1524_v3  ;;  %v1207_v16 = vcombine.high %v1205_v4, %v1205_v4 }
 0x121   : > { %v1373_v17 = vcombine.high %v1369_v9, %v1369_v9  ;;  %v1536_v18 = vrot.slane %v1372_v11, %v4398_v19  ;;  %v1544_v22 = vrot.slane %v1369_v9, %v4398_v19  ;;  %v1548_v23 = vrot.slane %v1371_v10, %v4398_v19 }
 0x122   : > { %v1683_v24 = vsel %vm1681_vm4, %v4428_v38, %v1528_v12  ;;  %v1684_v25 = vsel %vm1681_vm4, %v1138_v39, %v1532_v13  ;;  %v1686_v26 = vsel %vm1681_vm4, %v4425_v37, %v1540_v14  ;;  %v4550_v28 = vrot.slane %v1205_v4, %v4391_v8  ;;  %v4552_v32 = vpop.f32.mrb[4].mxu0 }
 0x123   : > { %v1552_v33 = vrot.slane %v1373_v17, %v4398_v19  ;;  %v1685_v34 = vsel %vm1681_vm4, %v1140_v48, %v1536_v18  ;;  %v1687_v30 = vsel %vm1681_vm4, %v4438_v46, %v1544_v22  ;;  %v1688_v39 = vsel %vm1681_vm4, %v1139_v47, %v1548_v23  ;;  %v4565_v36 = vpop.f32.mrb[5].mxu0 }
 0x124   : > { %v3168_v41 = vcombine.low %v1682_v15, %v1683_v24  ;;  %v3169_v44 = vcombine.low %v1684_v25, %v1685_v34  ;;  %v3185_v50 = vcombine.low %v1686_v26, %v1687_v30  ;;  %v4568_v51 = vrot.slane %v1206_v5, %v4391_v8 }
 0x125   : > { %v1689_v38 = vsel %vm1681_vm4, %v1141_v54, %v1552_v33  ;;  %v4575_v48 = vrot.slane %v1207_v16, %v4391_v8  ;;  %v1236_v37 = vcombine.high %v4530_v6, %v4530_v6  ;;  %v1237_v47 = vcombine.high %v4550_v28, %v4550_v28 }
 0x126   : > { %v3176_v52 = vrot.slane %v3168_v41, %v4400_v20  ;;  %v3183_v53 = vrot.slane %v3169_v44, %v4400_v20  ;;  %v3186_v57 = vcombine.low %v1688_v39, %v1689_v38  ;;  %v3193_v58 = vrot.slane %v3185_v50, %v4400_v20  ;;  %v4584_v59 = vpop.f32.mrb[4].mxu1  ;;  %v4586_v46 = vpop.f32.mrb[6].mxu0 }
 0x127   : > { %v1238_v54 = vcombine.high %v4568_v51, %v4568_v51  ;;  %v1239_v60 = vcombine.high %v4575_v48, %v4575_v48  ;;  %v1479_v61 = vrot.slane %v3931_v55, %v4391_v8  ;;  %v1486_v62 = vrot.slane %v1472_v0, %v4391_v8  ;;  %v4594_v63 = vpop.f32.mrb[5].mxu1  ;;  %v4596_v27 = vpop.f32.mrb[7].mxu0 }
 0x128   : > { %v3184_v40 = vcombine.low %v3176_v52, %v3183_v53  ;;  %v3200_v2 = vrot.slane %v3186_v57, %v4400_v20  ;;  %v1423_v45 = vcombine.high %v4516_v56, %v4516_v56  ;;  %v1430_v3 = vrot.slane %v4516_v56, %v4391_v8 }
 0x129   : > { %v1487_v4 = vcombine.high %v1479_v61, %v1479_v61  ;;  %v1488_v5 = vcombine.high %v1486_v62, %v1486_v62  ;;  %v1495_v55 = vrot.slane %v1479_v61, %v4391_v8  ;;  %v1502_v0 = vrot.slane %v1486_v62, %v4391_v8 }
 0x12a   : > { %v3201_v9 = vcombine.low %v3193_v58, %v3200_v2  ;;  %3456 = vst.msk [vmem:[%s4507_s25] sm:$0xff] %vm265_vm1, %v3184_v40  ;;  %v1437_v10 = vrot.slane %v1423_v45, %v4391_v8  ;;  %v1438_v11 = vcombine.high %v1430_v3, %v1430_v3  ;;  %v1446_v12 = vrot.slane %v1430_v3, %v4391_v8  ;;  %v4609_v13 = vpop.f32.mrb[6].mxu1 }
 0x12b   : > { %v1509_v14 = vrot.slane %v1487_v4, %v4391_v8  ;;  %v1516_v56 = vrot.slane %v1488_v5, %v4391_v8  ;;  %v1517_v15 = vcombine.high %v1495_v55, %v1495_v55  ;;  %v1518_v16 = vcombine.high %v1502_v0, %v1502_v0  ;;  %v4613_v17 = vpop.f32.mrb[7].mxu1 }
 0x12c   : > { %3457 = vst.msk [vmem:[%s4507_s25 + $0x8] sm:$0xff] %vm265_vm1, %v3201_v9  ;;  %v1620_v18 = vrot.slane %v1495_v55, %v4398_v19  ;;  %v1636_v22 = vrot.slane %v1502_v0, %v4398_v19  ;;  %v1439_v23 = vcombine.high %v1437_v10, %v1437_v10  ;;  %v1453_v24 = vrot.slane %v1437_v10, %v4391_v8 }
 0x12d   : > { %v1519_v25 = vcombine.high %v1509_v14, %v1509_v14  ;;  %v1520_v26 = vcombine.high %v1516_v56, %v1516_v56  ;;  %v1624_v33 = vrot.slane %v1509_v14, %v4398_v19  ;;  %v1628_v34 = vrot.slane %v1517_v15, %v4398_v19 }
 0x12e   : > { %v1640_v30 = vrot.slane %v1516_v56, %v4398_v19  ;;  %v1644_v39 = vrot.slane %v1518_v16, %v4398_v19  ;;  %v1706_v41 = vsel %vm1681_vm4, %v4462_v1, %v1620_v18  ;;  %v1710_v44 = vsel %vm1681_vm4, %v4479_v21, %v1636_v22 }
 0x12f   : > { %v1632_v50 = vrot.slane %v1519_v25, %v4398_v19  ;;  %v1648_v38 = vrot.slane %v1520_v26, %v4398_v19  ;;  %v1707_v52 = vsel %vm1681_vm4, %v4486_v29, %v1624_v33  ;;  %v1708_v53 = vsel %vm1681_vm4, %v1285_v35, %v1628_v34 }
 0x130   : > { %v1711_v57 = vsel %vm1681_vm4, %v4489_v31, %v1640_v30  ;;  %v1712_v58 = vsel %vm1681_vm4, %v1286_v42, %v1644_v39  ;;  %v3372_v61 = vcombine.low %v1706_v41, %v1707_v52  ;;  %v1460_v62 = vrot.slane %v1438_v11, %v4391_v8 }
 0x131   : > { %v1709_v40 = vsel %vm1681_vm4, %v1287_v43, %v1632_v50  ;;  %v1713_v1 = vsel %vm1681_vm4, %v1288_v49, %v1648_v38  ;;  %v3389_v35 = vcombine.low %v1710_v44, %v1711_v57  ;;  %v1467_v2 = vrot.slane %v1439_v23, %v4391_v8 }
 0x132   : > { %v3373_v45 = vcombine.low %v1708_v53, %v1709_v40  ;;  %v3380_v21 = vrot.slane %v3372_v61, %v4400_v20  ;;  %v3390_v42 = vcombine.low %v1712_v58, %v1713_v1  ;;  %v1468_v3 = vcombine.high %v1446_v12, %v1446_v12 }
 0x133   : > { %v3397_v4 = vrot.slane %v3389_v35, %v4400_v20  ;;  %v1469_v5 = vcombine.high %v1453_v24, %v1453_v24  ;;  %v1470_v55 = vcombine.high %v1460_v62, %v1460_v62  ;;  %v1471_v29 = vcombine.high %v1467_v2, %v1467_v2 }
 0x134   : > { %v3387_v43 = vrot.slane %v3373_v45, %v4400_v20  ;;  %v3404_v31 = vrot.slane %v3390_v42, %v4400_v20  ;;  %v1588_v49 = vrot.slane %v1446_v12, %v4398_v19  ;;  %v1592_v0 = vrot.slane %v1460_v62, %v4398_v19 }
 0x135   : > { %v1596_v9 = vrot.slane %v1468_v3, %v4398_v19  ;;  %v1600_v10 = vrot.slane %v1470_v55, %v4398_v19  ;;  %v1604_v11 = vrot.slane %v1453_v24, %v4398_v19  ;;  %v1608_v14 = vrot.slane %v1467_v2, %v4398_v19 }
 0x136   : > { %v3388_v56 = vcombine.low %v3380_v21, %v3387_v43  ;;  %v3405_v15 = vcombine.low %v3397_v4, %v3404_v31  ;;  %v1612_v16 = vrot.slane %v1469_v5, %v4398_v19  ;;  %v1616_v18 = vrot.slane %v1471_v29, %v4398_v19 }
 0x137   : > { %v1698_v22 = vsel %vm1681_vm4, %v4530_v6, %v1588_v49  ;;  %v1699_v12 = vsel %vm1681_vm4, %v4568_v51, %v1592_v0  ;;  %v1700_v23 = vsel %vm1681_vm4, %v1236_v37, %v1596_v9  ;;  %v1701_v24 = vsel %vm1681_vm4, %v1238_v54, %v1600_v10 }
 0x138   : > { %3468 = vst.msk [vmem:[%s4507_s25 + $0x60] sm:$0xff] %vm265_vm1, %v3388_v56  ;;  %3469 = vst.msk [vmem:[%s4507_s25 + $0x68] sm:$0xff] %vm265_vm1, %v3405_v15  ;;  %v1702_v25 = vsel %vm1681_vm4, %v4550_v28, %v1604_v11  ;;  %v1703_v26 = vsel %vm1681_vm4, %v4575_v48, %v1608_v14  ;;  %v1704_v6 = vsel %vm1681_vm4, %v1237_v47, %v1612_v16 }
 0x139   : > { %v1705_v51 = vsel %vm1681_vm4, %v1239_v60, %v1616_v18  ;;  %v3304_v37 = vcombine.low %v1698_v22, %v1699_v12  ;;  %v3305_v54 = vcombine.low %v1700_v23, %v1701_v24  ;;  %v3321_v33 = vcombine.low %v1702_v25, %v1703_v26 }
 0x13a   : > { %v3322_v34 = vcombine.low %v1704_v6, %v1705_v51  ;;  %v3933_v30 = vadd.f32 %v4552_v32, %v4389_v7  ;;  %v3934_v39 = vadd.f32 %v4389_v7, %v4565_v36  ;;  %v3937_v28 = vadd.f32 %v4584_v59, %v4389_v7 }
 0x13b   : > { %v3312_v47 = vrot.slane %v3304_v37, %v4400_v20  ;;  %v3319_v48 = vrot.slane %v3305_v54, %v4400_v20  ;;  %v3329_v60 = vrot.slane %v3321_v33, %v4400_v20  ;;  %v3935_v42 = vadd.f32 %v4586_v46, %v4389_v7 }
 0x13c   : > { %v3336_v41 = vrot.slane %v3322_v34, %v4400_v20  ;;  %v2533_v44 = vcombine.high %v3933_v30, %v3933_v30  ;;  %v2540_v50 = vrot.slane %v3933_v30, %v4391_v8  ;;  %v2484_v32 = vcombine.high %v3934_v39, %v3934_v39 }
 0x13d   : > { %v2491_v38 = vrot.slane %v3934_v39, %v4391_v8  ;;  %v3320_v36 = vcombine.low %v3312_v47, %v3319_v48  ;;  %v2765_v53 = vcombine.high %v3937_v28, %v3937_v28  ;;  %v2772_v59 = vrot.slane %v3937_v28, %v4391_v8 }
 0x13e   : > { %v3337_v52 = vcombine.low %v3329_v60, %v3336_v41  ;;  %v2547_v57 = vrot.slane %v2533_v44, %v4391_v8  ;;  %v2548_v58 = vcombine.high %v2540_v50, %v2540_v50  ;;  %v2556_v61 = vrot.slane %v2540_v50, %v4391_v8 }
 0x13f   : > { %3464 = vst.msk [vmem:[%s4507_s25 + $0x40] sm:$0xff] %vm265_vm1, %v3320_v36  ;;  %v2498_v62 = vrot.slane %v2484_v32, %v4391_v8  ;;  %v2779_v40 = vrot.slane %v2765_v53, %v4391_v8  ;;  %v2780_v45 = vcombine.high %v2772_v59, %v2772_v59  ;;  %v2499_v21 = vcombine.high %v2491_v38, %v2491_v38 }
 0x140   : > { %3465 = vst.msk [vmem:[%s4507_s25 + $0x48] sm:$0xff] %vm265_vm1, %v3337_v52  ;;  %v2549_v1 = vcombine.high %v2547_v57, %v2547_v57  ;;  %v2563_v35 = vrot.slane %v2547_v57, %v4391_v8  ;;  %v2570_v2 = vrot.slane %v2548_v58, %v4391_v8  ;;  %v2578_v4 = vcombine.high %v2556_v61, %v2556_v61 }
 0x141   : > { %v4719_v5 = vrot.slane %v2491_v38, %v4391_v8  ;;  %v2781_v55 = vcombine.high %v2779_v40, %v2779_v40  ;;  %v2500_v43 = vcombine.high %v2498_v62, %v2498_v62  ;;  %v4722_v31 = vrot.slane %v2498_v62, %v4391_v8 }
 0x142   : > { %v2577_v3 = vrot.slane %v2549_v1, %v4391_v8  ;;  %v2579_v29 = vcombine.high %v2563_v35, %v2563_v35  ;;  %v2788_v49 = vrot.slane %v2772_v59, %v4391_v8  ;;  %v2580_v0 = vcombine.high %v2570_v2, %v2570_v2 }
 0x143   : > { %v2795_v9 = vrot.slane %v2779_v40, %v4391_v8  ;;  %v2802_v10 = vrot.slane %v2780_v45, %v4391_v8  ;;  %v2809_v46 = vrot.slane %v2781_v55, %v4391_v8  ;;  %v2631_v15 = vcombine.high %v3935_v42, %v3935_v42 }
 0x144   : > { %v2581_v11 = vcombine.high %v2577_v3, %v2577_v3  ;;  %v2810_v14 = vcombine.high %v2788_v49, %v2788_v49  ;;  %v2947_v56 = vrot.slane %v2788_v49, %v4398_v19  ;;  %v2521_v41 = vrot.slane %v2499_v21, %v4391_v8 }
 0x145   : > { %v2811_v16 = vcombine.high %v2795_v9, %v2795_v9  ;;  %v2812_v18 = vcombine.high %v2802_v10, %v2802_v10  ;;  %v2813_v22 = vcombine.high %v2809_v46, %v2809_v46  ;;  %v2951_v12 = vrot.slane %v2802_v10, %v4398_v19 }
 0x146   : > { %v2955_v23 = vrot.slane %v2810_v14, %v4398_v19  ;;  %v2963_v24 = vrot.slane %v2795_v9, %v4398_v19  ;;  %v2967_v25 = vrot.slane %v2809_v46, %v4398_v19  ;;  %v3080_v26 = vsel %vm1681_vm4, %v2556_v61, %v2947_v56 }
 0x147   : > { %v2959_v6 = vrot.slane %v2812_v18, %v4398_v19  ;;  %v2971_v51 = vrot.slane %v2811_v16, %v4398_v19  ;;  %v2975_v37 = vrot.slane %v2813_v22, %v4398_v19  ;;  %v3081_v54 = vsel %vm1681_vm4, %v2570_v2, %v2951_v12 }
 0x148   : > { %v3082_v33 = vsel %vm1681_vm4, %v2578_v4, %v2955_v23  ;;  %v3084_v34 = vsel %vm1681_vm4, %v2563_v35, %v2963_v24  ;;  %v3085_v30 = vsel %vm1681_vm4, %v2577_v3, %v2967_v25  ;;  %v3270_v39 = vcombine.low %v3080_v26, %v3081_v54 }
 0x149   : > { %v3083_v28 = vsel %vm1681_vm4, %v2580_v0, %v2959_v6  ;;  %v3086_v47 = vsel %vm1681_vm4, %v2579_v29, %v2971_v51  ;;  %v3087_v48 = vsel %vm1681_vm4, %v2581_v11, %v2975_v37  ;;  %v3287_v60 = vcombine.low %v3084_v34, %v3085_v30 }
 0x14a   : > { %v3271_v44 = vcombine.low %v3082_v33, %v3083_v28  ;;  %v3288_v50 = vcombine.low %v3086_v47, %v3087_v48  ;;  %v2638_v32 = vrot.slane %v3935_v42, %v4391_v8  ;;  %v2528_v38 = vrot.slane %v2500_v43, %v4391_v8 }
 0x14b   : > { %v3278_v36 = vrot.slane %v3270_v39, %v4400_v20  ;;  %v3295_v52 = vrot.slane %v3287_v60, %v4400_v20  ;;  %v3938_v53 = vadd.f32 %v4389_v7, %v4594_v63  ;;  %v2645_v58 = vrot.slane %v2631_v15, %v4391_v8 }
 0x14c   : > { %v3285_v59 = vrot.slane %v3271_v44, %v4400_v20  ;;  %v3302_v57 = vrot.slane %v3288_v50, %v4400_v20  ;;  %v3936_v61 = vadd.f32 %v4389_v7, %v4596_v27  ;;  %v2529_v62 = vcombine.high %v4719_v5, %v4719_v5 }
 0x14d   : > { %v2530_v40 = vcombine.high %v4722_v31, %v4722_v31  ;;  %v2716_v1 = vcombine.high %v3938_v53, %v3938_v53  ;;  %v2723_v63 = vrot.slane %v3938_v53, %v4391_v8  ;;  %v2531_v35 = vcombine.high %v2521_v41, %v2521_v41 }
 0x14e   : > { %v3286_v2 = vcombine.low %v3278_v36, %v3285_v59  ;;  %v3303_v45 = vcombine.low %v3295_v52, %v3302_v57  ;;  %v2646_v21 = vcombine.high %v2638_v32, %v2638_v32  ;;  %v2532_v42 = vcombine.high %v2528_v38, %v2528_v38 }
 0x14f   : > { %v4762_v3 = vrot.slane %v2638_v32, %v4391_v8  ;;  %v2730_v4 = vrot.slane %v2716_v1, %v4391_v8  ;;  %v2731_v27 = vcombine.high %v2723_v63, %v2723_v63  ;;  %v2647_v55 = vcombine.high %v2645_v58, %v2645_v58 }
 0x150   : > { %3462 = vst.msk [vmem:[%s4507_s25 + $0x30] sm:$0xff] %vm265_vm1, %v3286_v2  ;;  %3463 = vst.msk [vmem:[%s4507_s25 + $0x38] sm:$0xff] %vm265_vm1, %v3303_v45  ;;  %v2739_v29 = vrot.slane %v2723_v63, %v4391_v8  ;;  %v2582_v43 = vcombine.high %v3936_v61, %v3936_v61  ;;  %v2589_v49 = vrot.slane %v3936_v61, %v4391_v8 }
 0x151   : > { %v4772_v0 = vrot.slane %v2645_v58, %v4391_v8  ;;  %v2732_v9 = vcombine.high %v2730_v4, %v2730_v4  ;;  %v2746_v10 = vrot.slane %v2730_v4, %v4391_v8  ;;  %v2753_v46 = vrot.slane %v2731_v27, %v4391_v8 }
 0x152   : > { %v4777_v11 = vrot.slane %v2646_v21, %v4391_v8  ;;  %v2761_v14 = vcombine.high %v2739_v29, %v2739_v29  ;;  %v2915_v56 = vrot.slane %v2739_v29, %v4398_v19  ;;  %v2596_v15 = vrot.slane %v2582_v43, %v4391_v8 }
 0x153   : > { %v2760_v16 = vrot.slane %v2732_v9, %v4391_v8  ;;  %v2762_v18 = vcombine.high %v2746_v10, %v2746_v10  ;;  %v2763_v22 = vcombine.high %v2753_v46, %v2753_v46  ;;  %v2919_v12 = vrot.slane %v2753_v46, %v4398_v19 }
 0x154   : > { %v2923_v23 = vrot.slane %v2761_v14, %v4398_v19  ;;  %v2931_v24 = vrot.slane %v2746_v10, %v4398_v19  ;;  %v3072_v25 = vsel %vm1681_vm4, %v4719_v5, %v2915_v56  ;;  %v2597_v26 = vcombine.high %v2589_v49, %v2589_v49 }
 0x155   : > { %v2764_v6 = vcombine.high %v2760_v16, %v2760_v16  ;;  %v2927_v51 = vrot.slane %v2763_v22, %v4398_v19  ;;  %v2935_v37 = vrot.slane %v2760_v16, %v4398_v19  ;;  %v2939_v54 = vrot.slane %v2762_v18, %v4398_v19 }
 0x156   : > { %v3073_v33 = vsel %vm1681_vm4, %v2521_v41, %v2919_v12  ;;  %v3074_v34 = vsel %vm1681_vm4, %v2529_v62, %v2923_v23  ;;  %v3076_v30 = vsel %vm1681_vm4, %v4722_v31, %v2931_v24  ;;  %v2598_v39 = vcombine.high %v2596_v15, %v2596_v15 }
 0x157   : > { %v2943_v28 = vrot.slane %v2764_v6, %v4398_v19  ;;  %v3075_v5 = vsel %vm1681_vm4, %v2531_v35, %v2927_v51  ;;  %v3077_v47 = vsel %vm1681_vm4, %v2528_v38, %v2935_v37  ;;  %v3078_v48 = vsel %vm1681_vm4, %v2530_v40, %v2939_v54 }
 0x158   : > { %v2676_v60 = vcombine.high %v4762_v3, %v4762_v3  ;;  %v3202_v44 = vcombine.low %v3072_v25, %v3073_v33  ;;  %v3203_v50 = vcombine.low %v3074_v34, %v3075_v5  ;;  %v3219_v41 = vcombine.low %v3076_v30, %v3077_v47 }
 0x159   : > { %v4801_v32 = vrot.slane %v2647_v55, %v4391_v8  ;;  %v2677_v31 = vcombine.high %v4772_v0, %v4772_v0  ;;  %v3079_v36 = vsel %vm1681_vm4, %v2532_v42, %v2943_v28  ;;  %v4807_v52 = vrot.slane %v2589_v49, %v4391_v8 }
 0x15a   : > { %v3210_v38 = vrot.slane %v3202_v44, %v4400_v20  ;;  %v3217_v53 = vrot.slane %v3203_v50, %v4400_v20  ;;  %v3220_v59 = vcombine.low %v3078_v48, %v3079_v36  ;;  %v4812_v57 = vrot.slane %v2596_v15, %v4391_v8 }
 0x15b   : > { %v2678_v58 = vcombine.high %v4777_v11, %v4777_v11  ;;  %v4817_v61 = vrot.slane %v2597_v26, %v4391_v8  ;;  %v4820_v62 = vrot.slane %v2598_v39, %v4391_v8  ;;  %v3939_v40 = vadd.f32 %v4609_v13, %v4389_v7 }
 0x15c   : > { %v3218_v1 = vcombine.low %v3210_v38, %v3217_v53  ;;  %v3227_v63 = vrot.slane %v3219_v41, %v4400_v20  ;;  %v3234_v35 = vrot.slane %v3220_v59, %v4400_v20  ;;  %v3940_v2 = vadd.f32 %v4389_v7, %v4613_v17 }
 0x15d   : > { %v2679_v45 = vcombine.high %v4801_v32, %v4801_v32  ;;  %v2627_v21 = vcombine.high %v4807_v52, %v4807_v52  ;;  %v2863_v42 = vcombine.high %v3939_v40, %v3939_v40  ;;  %v2870_v4 = vrot.slane %v3939_v40, %v4391_v8 }
 0x15e   : > { %v3235_v27 = vcombine.low %v3227_v63, %v3234_v35  ;;  %3458 = vst.msk [vmem:[%s4507_s25 + $0x10] sm:$0xff] %vm265_vm1, %v3218_v1  ;;  %v2628_v13 = vcombine.high %v4812_v57, %v4812_v57  ;;  %v2814_v55 = vcombine.high %v3940_v2, %v3940_v2  ;;  %v2821_v29 = vrot.slane %v3940_v2, %v4391_v8 }
 0x15f   : > { %v2629_v7 = vcombine.high %v4817_v61, %v4817_v61  ;;  %v2877_v17 = vrot.slane %v2863_v42, %v4391_v8  ;;  %v2878_v43 = vcombine.high %v2870_v4, %v2870_v4  ;;  %v2886_v49 = vrot.slane %v2870_v4, %v4391_v8 }
 0x160   : > { %3459 = vst.msk [vmem:[%s4507_s25 + $0x18] sm:$0xff] %vm265_vm1, %v3235_v27  ;;  %v2630_v9 = vcombine.high %v4820_v62, %v4820_v62  ;;  %v2828_v10 = vrot.slane %v2814_v55, %v4391_v8  ;;  %v2829_v46 = vcombine.high %v2821_v29, %v2821_v29  ;;  %v2837_v14 = vrot.slane %v2821_v29, %v4391_v8 }
 0x161   : > { %v2879_v56 = vcombine.high %v2877_v17, %v2877_v17  ;;  %v2893_v15 = vrot.slane %v2877_v17, %v4391_v8  ;;  %v2900_v16 = vrot.slane %v2878_v43, %v4391_v8  ;;  %v2908_v18 = vcombine.high %v2886_v49, %v2886_v49 }
 0x162   : > { %v3011_v22 = vrot.slane %v2886_v49, %v4398_v19  ;;  %v2830_v12 = vcombine.high %v2828_v10, %v2828_v10  ;;  %v2844_v23 = vrot.slane %v2828_v10, %v4391_v8  ;;  %v2851_v24 = vrot.slane %v2829_v46, %v4391_v8 }
 0x163   : > { %v2907_v25 = vrot.slane %v2879_v56, %v4391_v8  ;;  %v2909_v26 = vcombine.high %v2893_v15, %v2893_v15  ;;  %v2910_v6 = vcombine.high %v2900_v16, %v2900_v16  ;;  %v3015_v51 = vrot.slane %v2900_v16, %v4398_v19 }
 0x164   : > { %v3019_v37 = vrot.slane %v2908_v18, %v4398_v19  ;;  %v3027_v54 = vrot.slane %v2893_v15, %v4398_v19  ;;  %v3096_v33 = vsel %vm1681_vm4, %v4762_v3, %v3011_v22  ;;  %v2858_v34 = vrot.slane %v2830_v12, %v4391_v8 }
 0x165   : > { %v2911_v30 = vcombine.high %v2907_v25, %v2907_v25  ;;  %v3023_v39 = vrot.slane %v2910_v6, %v4398_v19  ;;  %v3031_v28 = vrot.slane %v2907_v25, %v4398_v19  ;;  %v3035_v5 = vrot.slane %v2909_v26, %v4398_v19 }
 0x166   : > { %v3097_v47 = vsel %vm1681_vm4, %v4777_v11, %v3015_v51  ;;  %v3098_v48 = vsel %vm1681_vm4, %v2676_v60, %v3019_v37  ;;  %v3100_v44 = vsel %vm1681_vm4, %v4772_v0, %v3027_v54  ;;  %v2859_v50 = vcombine.high %v2837_v14, %v2837_v14 }
 0x167   : > { %v3039_v3 = vrot.slane %v2911_v30, %v4398_v19  ;;  %v3099_v8 = vsel %vm1681_vm4, %v2678_v58, %v3023_v39  ;;  %v3101_v41 = vsel %vm1681_vm4, %v4801_v32, %v3031_v28  ;;  %v3102_v36 = vsel %vm1681_vm4, %v2677_v31, %v3035_v5 }
 0x168   : > { %v3406_v38 = vcombine.low %v3096_v33, %v3097_v47  ;;  %v3407_v53 = vcombine.low %v3098_v48, %v3099_v8  ;;  %v3423_v59 = vcombine.low %v3100_v44, %v3101_v41  ;;  %v2860_v40 = vcombine.high %v2844_v23, %v2844_v23 }
 0x169   : > { %v3103_v11 = vsel %vm1681_vm4, %v2679_v45, %v3039_v3  ;;  %v2861_v60 = vcombine.high %v2851_v24, %v2851_v24  ;;  %v2862_v1 = vcombine.high %v2858_v34, %v2858_v34  ;;  %v2979_v0 = vrot.slane %v2837_v14, %v4398_v19 }
 0x16a   : > { %v3414_v63 = vrot.slane %v3406_v38, %v4400_v20  ;;  %v3421_v35 = vrot.slane %v3407_v53, %v4400_v20  ;;  %v3424_v58 = vcombine.low %v3102_v36, %v3103_v11  ;;  %v3431_v32 = vrot.slane %v3423_v59, %v4400_v20 }
 0x16b   : > { %v2983_v31 = vrot.slane %v2851_v24, %v4398_v19  ;;  %v2987_v2 = vrot.slane %v2859_v50, %v4398_v19  ;;  %v2991_v42 = vrot.slane %v2861_v60, %v4398_v19  ;;  %v2995_v45 = vrot.slane %v2844_v23, %v4398_v19 }
 0x16c   : > { %v3422_v4 = vcombine.low %v3414_v63, %v3421_v35  ;;  %v3438_v27 = vrot.slane %v3424_v58, %v4400_v20  ;;  %v2999_v55 = vrot.slane %v2858_v34, %v4398_v19  ;;  %v3003_v29 = vrot.slane %v2860_v40, %v4398_v19 }
 0x16d   : > { %v3007_v17 = vrot.slane %v2862_v1, %v4398_v19  ;;  %v3088_v43 = vsel %vm1681_vm4, %v4807_v52, %v2979_v0  ;;  %v3089_v49 = vsel %vm1681_vm4, %v4817_v61, %v2983_v31  ;;  %v3090_v10 = vsel %vm1681_vm4, %v2627_v21, %v2987_v2 }
 0x16e   : > { %v3439_v46 = vcombine.low %v3431_v32, %v3438_v27  ;;  %3470 = vst.msk [vmem:[%s4507_s25 + $0x70] sm:$0xff] %vm265_vm1, %v3422_v4  ;;  %v3091_v14 = vsel %vm1681_vm4, %v2629_v7, %v2991_v42  ;;  %v3092_v19 = vsel %vm1681_vm4, %v4812_v57, %v2995_v45  ;;  %v3093_v56 = vsel %vm1681_vm4, %v4820_v62, %v2999_v55 }
 0x16f   : > { %v3094_v52 = vsel %vm1681_vm4, %v2628_v13, %v3003_v29  ;;  %v3095_v61 = vsel %vm1681_vm4, %v2630_v9, %v3007_v17  ;;  %v3338_v21 = vcombine.low %v3088_v43, %v3089_v49  ;;  %v3339_v7 = vcombine.low %v3090_v10, %v3091_v14 }
 0x170   : > { %3471 = vst.msk [vmem:[%s4507_s25 + $0x78] sm:$0xff] %vm265_vm1, %v3439_v46  ;;  %v3355_v15 = vcombine.low %v3092_v19, %v3093_v56  ;;  %v3356_v16 = vcombine.low %v3094_v52, %v3095_v61 }
 0x171   : > { %v3346_v18 = vrot.slane %v3338_v21, %v4400_v20  ;;  %v3353_v22 = vrot.slane %v3339_v7, %v4400_v20 }
 0x172   : > { %v3363_v12 = vrot.slane %v3355_v15, %v4400_v20  ;;  %v3370_v57 = vrot.slane %v3356_v16, %v4400_v20 }
 0x173   : > { %v3354_v13 = vcombine.low %v3346_v18, %v3353_v22 }
 0x174   : > { %v3371_v23 = vcombine.low %v3363_v12, %v3370_v57 }
 0x175   : > { %3466 = vst.msk [vmem:[%s4507_s25 + $0x50] sm:$0xff] %vm265_vm1, %v3354_v13 }
 0x176   : > { %3467 = vst.msk [vmem:[%s4507_s25 + $0x58] sm:$0xff] %vm265_vm1, %v3371_v23 }
 0x177 PF: > { %s13_s16 = sadd.s32 1, %s4070_s16   ;;  %s4942_s12 = smov %s4062_s14 }
 0x178   : > { %p10_p7 = scmp.ge.s32.totalorder %s13_s16, 18   ;;  %s4943_s13 = smov %s4066_s15 }
 0x179   : > { %s4944_s14 = smov %s4947_s17  ;;  %s4945_s15 = smov %s4951_s18 }
 0x17a   :  { %12 = sbr.rel (!%p10_p7) target bundleno = 3 (0x3), region = 84 }

</bundles_post_ra>
